<compile_context>
chip_gen: v7x
topology: tpu7x:2x2x1
jax: 0.10.0
libtpu: 0.0.40
codegen_flags: <defaults>
</compile_context>

<pallas_src>
import jax
import jax.numpy as jnp
from jax.experimental import pallas as pl
from jax.experimental.pallas import tpu as pltpu


def _fc_generator_kernel(x_ref, w1_ref, b1_ref, w2_ref, b2_ref, w3_ref, b3_ref,
                         o_ref):
    # Layer 1: (TB, F) @ (F, H) + (1, H) -> ReLU   (bf16 operands, f32 accum)
    h1 = jnp.dot(x_ref[...], w1_ref[...], preferred_element_type=jnp.float32)
    h1 = jnp.maximum(h1 + b1_ref[...], 0.0)

    # Layer 2: (TB, H) @ (H, H) + (1, H) -> ReLU
    h2 = jnp.dot(h1.astype(w2_ref.dtype), w2_ref[...],
                 preferred_element_type=jnp.float32)
    h2 = jnp.maximum(h2 + b2_ref[...], 0.0)

    # Layer 3: (TB, H) @ (H, O) + (1, O) -> Tanh
    h3 = jnp.dot(h2.astype(w3_ref.dtype), w3_ref[...],
                 preferred_element_type=jnp.float32)
    o_ref[...] = jnp.tanh(h3 + b3_ref[...]).astype(o_ref.dtype)


def fc_generator_forward(x, params, *, batch_tile=1024,
                         compute_dtype=jnp.bfloat16):
    """x: (B, z_dim) float32. Returns (B, output_dim) float32 in (-1, 1)."""
    w1, b1, w2, b2, w3, b3 = params
    B, F = x.shape
    H = w1.shape[1]
    O = w3.shape[1]

    # Zero-pad hidden dim to the 128-lane vreg width. Zero columns give
    # ReLU(0 + 0) = 0 activations which contribute nothing downstream, so the
    # math is unchanged while MXU lanes / vregs are fully used.
    Hp = ((H + 127) // 128) * 128
    if Hp != H:
        w1 = jnp.pad(w1, ((0, 0), (0, Hp - H)))
        b1 = jnp.pad(b1, ((0, 0), (0, Hp - H)))
        w2 = jnp.pad(w2, ((0, Hp - H), (0, Hp - H)))
        b2 = jnp.pad(b2, ((0, 0), (0, Hp - H)))
        w3 = jnp.pad(w3, ((0, Hp - H), (0, 0)))

    # bf16 streaming for the big operands (x, weights); biases stay f32.
    xc = x.astype(compute_dtype)
    w1c = w1.astype(compute_dtype)
    w2c = w2.astype(compute_dtype)
    w3c = w3.astype(compute_dtype)

    # Batch tile: multiple of 8 when tiling; full-B block when B is small.
    # 1024-row bf16 tiles stay far under the v7x 64 MiB VMEM budget while
    # already sitting near the HBM roofline on v5e/v6e.
    TB = B if B <= batch_tile else batch_tile
    grid = (pl.cdiv(B, TB),)

    # Weights/biases: constant block index -> VMEM-resident across grid steps.
    resident = lambda shape: pl.BlockSpec(shape, lambda i: (0, 0))

    itemsize = jnp.dtype(compute_dtype).itemsize
    flops = 2 * B * (F * Hp + Hp * Hp + Hp * O)
    bytes_accessed = (
        xc.size * itemsize
        + (w1c.size + w2c.size + w3c.size) * itemsize
        + (b1.size + b2.size + b3.size) * 4
        + B * O * 4
    )
    cost = pl.CostEstimate(flops=flops, transcendentals=B * O,
                           bytes_accessed=bytes_accessed)

    out = pl.pallas_call(
        _fc_generator_kernel,
        out_shape=jax.ShapeDtypeStruct((B, O), jnp.float32),
        grid=grid,
        in_specs=[
            pl.BlockSpec((TB, F), lambda i: (i, 0)),   # x: tiled over batch
            resident((F, Hp)),                         # w1
            resident((1, Hp)),                         # b1
            resident((Hp, Hp)),                        # w2
            resident((1, Hp)),                         # b2
            resident((Hp, O)),                         # w3
            resident((1, O)),                          # b3
        ],
        out_specs=pl.BlockSpec((TB, O), lambda i: (i, 0)),
        compiler_params=pltpu.CompilerParams(
            dimension_semantics=("parallel",),
        ),
        cost_estimate=cost,
    )(xc, w1c, b1, w2c, b2, w3c, b3)
    return out


def init_params(key, z_dim, output_dim, n_hidden=64):
    """Deterministic init mirroring nn.Linear shapes (stored transposed)."""
    k1, k2, k3, k4, k5, k6 = jax.random.split(key, 6)

    def lin_init(kw, kb, fan_in, fan_out):
        # PyTorch default: U(-1/sqrt(fan_in), 1/sqrt(fan_in))
        bound = 1.0 / jnp.sqrt(jnp.float32(fan_in))
        w = jax.random.uniform(kw, (fan_in, fan_out), jnp.float32, -bound, bound)
        b = jax.random.uniform(kb, (1, fan_out), jnp.float32, -bound, bound)
        return w, b

    w1, b1 = lin_init(k1, k2, z_dim, n_hidden)
    w2, b2 = lin_init(k3, k4, n_hidden, n_hidden)
    w3, b3 = lin_init(k5, k6, n_hidden, output_dim)
    return (w1, b1, w2, b2, w3, b3)


if __name__ == "__main__":
    key = jax.random.PRNGKey(0)
    kx, kp = jax.random.split(key)

    z_dim = 64
    n_hidden = 64
    output_dim = 3 * 16 * 16     # e.g. a 16x16 RGB image, flattened
    batch = 256
    batch_tile = 128             # -> 2 grid steps, exercises the batch tiling

    x = jax.random.normal(kx, (batch, z_dim), jnp.float32)
    params = init_params(kp, z_dim, output_dim, n_hidden)

    out = fc_generator_forward(x, params, batch_tile=batch_tile)
    out = jax.block_until_ready(out)
    assert out.shape == (batch, output_dim), out.shape

    w1, b1, w2, b2, w3, b3 = params

    # Reference with the same bf16-operand / f32-accumulate recipe (tight tol).
    bf = jnp.bfloat16
    h = jnp.maximum(jnp.dot(x.astype(bf), w1.astype(bf),
                            preferred_element_type=jnp.float32) + b1, 0.0)
    h = jnp.maximum(jnp.dot(h.astype(bf), w2.astype(bf),
                            preferred_element_type=jnp.float32) + b2, 0.0)
    ref_bf16 = jnp.tanh(jnp.dot(h.astype(bf), w3.astype(bf),
                                preferred_element_type=jnp.float32) + b3)
    assert jnp.allclose(out, ref_bf16, atol=1e-2, rtol=1e-2), \
        "mismatch vs bf16 reference"

    # Full-f32 reference of the original module semantics (loose tol, bf16 stream).
    r = jnp.maximum(x @ w1 + b1, 0.0)
    r = jnp.maximum(r @ w2 + b2, 0.0)
    ref_f32 = jnp.tanh(r @ w3 + b3)
    assert jnp.allclose(out, ref_f32, atol=5e-2, rtol=5e-2), \
        "mismatch vs f32 reference"

    print("KERNEL_OK")
</pallas_src>

<mosaic_0001>
module attributes {stable_mosaic.version = 11 : i64} {
  func.func @_fc_generator_kernel(%arg0: i32, %arg1: memref<128x64xbf16, #tpu.memory_space<vmem>>, %arg2: memref<64x128xbf16, #tpu.memory_space<vmem>>, %arg3: memref<1x128xf32, #tpu.memory_space<vmem>>, %arg4: memref<128x128xbf16, #tpu.memory_space<vmem>>, %arg5: memref<1x128xf32, #tpu.memory_space<vmem>>, %arg6: memref<128x768xbf16, #tpu.memory_space<vmem>>, %arg7: memref<1x768xf32, #tpu.memory_space<vmem>>, %arg8: memref<128x768xf32, #tpu.memory_space<vmem>>) attributes {dimension_semantics = [#tpu.dimension_semantics<parallel>], iteration_bounds = array<i64: 2>, scalar_prefetch = 0 : i64, scratch_operands = 0 : i64, tpu.core_type = #tpu.core_type<tc>, window_params = [{transform_indices = @transform_0, window_bounds = array<i64: 128, 64>}, {pipeline_mode = #tpu.pipeline_mode<synchronous>, transform_indices = @transform_1, window_bounds = array<i64: 64, 128>}, {pipeline_mode = #tpu.pipeline_mode<synchronous>, transform_indices = @transform_2, window_bounds = array<i64: 1, 128>}, {pipeline_mode = #tpu.pipeline_mode<synchronous>, transform_indices = @transform_3, window_bounds = array<i64: 128, 128>}, {pipeline_mode = #tpu.pipeline_mode<synchronous>, transform_indices = @transform_4, window_bounds = array<i64: 1, 128>}, {pipeline_mode = #tpu.pipeline_mode<synchronous>, transform_indices = @transform_5, window_bounds = array<i64: 128, 768>}, {pipeline_mode = #tpu.pipeline_mode<synchronous>, transform_indices = @transform_6, window_bounds = array<i64: 1, 768>}, {transform_indices = @transform_7, window_bounds = array<i64: 128, 768>}]} {
    %c0 = arith.constant 0 : index
    %c0_0 = arith.constant 0 : index
    %0 = vector.load %arg1[%c0, %c0_0] : memref<128x64xbf16, #tpu.memory_space<vmem>>, vector<128x64xbf16>
    %c0_1 = arith.constant 0 : index
    %c0_2 = arith.constant 0 : index
    %1 = vector.load %arg2[%c0_1, %c0_2] : memref<64x128xbf16, #tpu.memory_space<vmem>>, vector<64x128xbf16>
    %cst = arith.constant dense<0.000000e+00> : vector<128x128xf32>
    %2 = tpu.matmul %0, %1, %cst {dimension_numbers = #tpu.dot_dimension_numbers<[1], [0], [0], [1], [0, 0, 1, 1], [], []>} : vector<128x64xbf16>, vector<64x128xbf16>, vector<128x128xf32> -> vector<128x128xf32>
    %c0_3 = arith.constant 0 : index
    %c0_4 = arith.constant 0 : index
    %3 = vector.load %arg3[%c0_3, %c0_4] : memref<1x128xf32, #tpu.memory_space<vmem>>, vector<1x128xf32>
    %4 = vector.broadcast %3 : vector<1x128xf32> to vector<128x128xf32>
    %5 = arith.addf %2, %4 : vector<128x128xf32>
    %cst_5 = arith.constant 0.000000e+00 : f32
    %6 = vector.broadcast %cst_5 : f32 to vector<128x128xf32>
    %7 = arith.maximumf %5, %6 : vector<128x128xf32>
    %8 = arith.truncf %7 : vector<128x128xf32> to vector<128x128xbf16>
    %c0_6 = arith.constant 0 : index
    %c0_7 = arith.constant 0 : index
    %9 = vector.load %arg4[%c0_6, %c0_7] : memref<128x128xbf16, #tpu.memory_space<vmem>>, vector<128x128xbf16>
    %cst_8 = arith.constant dense<0.000000e+00> : vector<128x128xf32>
    %10 = tpu.matmul %8, %9, %cst_8 {dimension_numbers = #tpu.dot_dimension_numbers<[1], [0], [0], [1], [0, 0, 1, 1], [], []>} : vector<128x128xbf16>, vector<128x128xbf16>, vector<128x128xf32> -> vector<128x128xf32>
    %c0_9 = arith.constant 0 : index
    %c0_10 = arith.constant 0 : index
    %11 = vector.load %arg5[%c0_9, %c0_10] : memref<1x128xf32, #tpu.memory_space<vmem>>, vector<1x128xf32>
    %12 = vector.broadcast %11 : vector<1x128xf32> to vector<128x128xf32>
    %13 = arith.addf %10, %12 : vector<128x128xf32>
    %cst_11 = arith.constant 0.000000e+00 : f32
    %14 = vector.broadcast %cst_11 : f32 to vector<128x128xf32>
    %15 = arith.maximumf %13, %14 : vector<128x128xf32>
    %16 = arith.truncf %15 : vector<128x128xf32> to vector<128x128xbf16>
    %c0_12 = arith.constant 0 : index
    %c0_13 = arith.constant 0 : index
    %17 = vector.load %arg6[%c0_12, %c0_13] : memref<128x768xbf16, #tpu.memory_space<vmem>>, vector<128x768xbf16>
    %cst_14 = arith.constant dense<0.000000e+00> : vector<128x768xf32>
    %18 = tpu.matmul %16, %17, %cst_14 {dimension_numbers = #tpu.dot_dimension_numbers<[1], [0], [0], [1], [0, 0, 1, 1], [], []>} : vector<128x128xbf16>, vector<128x768xbf16>, vector<128x768xf32> -> vector<128x768xf32>
    %c0_15 = arith.constant 0 : index
    %c0_16 = arith.constant 0 : index
    %19 = vector.load %arg7[%c0_15, %c0_16] : memref<1x768xf32, #tpu.memory_space<vmem>>, vector<1x768xf32>
    %20 = vector.broadcast %19 : vector<1x768xf32> to vector<128x768xf32>
    %21 = arith.addf %18, %20 : vector<128x768xf32>
    %22 = math.tanh %21 : vector<128x768xf32>
    %c0_17 = arith.constant 0 : index
    %c0_18 = arith.constant 0 : index
    %23 = vector.load %arg8[%c0_17, %c0_18] : memref<128x768xf32, #tpu.memory_space<vmem>>, vector<128x768xf32>
    tpu.vector_store %arg8[%c0_17, %c0_18], %22 {strides = array<i32>} : memref<128x768xf32, #tpu.memory_space<vmem>>, vector<128x768xf32>,
    return
  }
  func.func @transform_0(%arg0: i32) -> (i32, i32) {
    %c0_i32 = arith.constant 0 : i32
    %c0_i32_0 = arith.constant 0 : i32
    return %arg0, %c0_i32 : i32, i32
  }
  func.func @transform_1(%arg0: i32) -> (i32, i32) {
    %c0_i32 = arith.constant 0 : i32
    %c0_i32_0 = arith.constant 0 : i32
    %c0_i32_1 = arith.constant 0 : i32
    return %c0_i32, %c0_i32_0 : i32, i32
  }
  func.func @transform_2(%arg0: i32) -> (i32, i32) {
    %c0_i32 = arith.constant 0 : i32
    %c0_i32_0 = arith.constant 0 : i32
    %c0_i32_1 = arith.constant 0 : i32
    return %c0_i32, %c0_i32_0 : i32, i32
  }
  func.func @transform_3(%arg0: i32) -> (i32, i32) {
    %c0_i32 = arith.constant 0 : i32
    %c0_i32_0 = arith.constant 0 : i32
    %c0_i32_1 = arith.constant 0 : i32
    return %c0_i32, %c0_i32_0 : i32, i32
  }
  func.func @transform_4(%arg0: i32) -> (i32, i32) {
    %c0_i32 = arith.constant 0 : i32
    %c0_i32_0 = arith.constant 0 : i32
    %c0_i32_1 = arith.constant 0 : i32
    return %c0_i32, %c0_i32_0 : i32, i32
  }
  func.func @transform_5(%arg0: i32) -> (i32, i32) {
    %c0_i32 = arith.constant 0 : i32
    %c0_i32_0 = arith.constant 0 : i32
    %c0_i32_1 = arith.constant 0 : i32
    return %c0_i32, %c0_i32_0 : i32, i32
  }
  func.func @transform_6(%arg0: i32) -> (i32, i32) {
    %c0_i32 = arith.constant 0 : i32
    %c0_i32_0 = arith.constant 0 : i32
    %c0_i32_1 = arith.constant 0 : i32
    return %c0_i32, %c0_i32_0 : i32, i32
  }
  func.func @transform_7(%arg0: i32) -> (i32, i32) {
    %c0_i32 = arith.constant 0 : i32
    %c0_i32_0 = arith.constant 0 : i32
    return %arg0, %c0_i32 : i32, i32
  }
}

</mosaic_0001>

<bundles_post_ra>
// kernel: tpu_custom_call.1
= control target key start
LH: loop header
LB: loop body
LE: loop exit
PB: predicated region body
PF: predicated region fallthrough
CT: control target
= control target key end

     0   :  { %12 = vsyncpa [#allocation3], 0  ;;  %s2861_s0 = inlined_call_operand.vmem [shape: bf16[256,64], index: 0, kind: input, shape index: {}]   ;;  %s2862_s1 = inlined_call_operand.vmem [shape: bf16[64,128], index: 1, kind: input, shape index: {}]   ;;  %s2863_s2 = inlined_call_operand.vmem [shape: f32[1,128], index: 2, kind: input, shape index: {}]   ;;  %s2864_s3 = inlined_call_operand.vmem [shape: bf16[128,128], index: 3, kind: input, shape index: {}]   ;;  %s2865_s4 = inlined_call_operand.vmem [shape: f32[1,128], index: 4, kind: input, shape index: {}]   ;;  %s2866_s5 = inlined_call_operand.hbm [shape: bf16[128,768], index: 5, kind: input, shape index: {}]   ;;  %s2867_s6 = inlined_call_operand.vmem [shape: f32[1,768], index: 6, kind: input, shape index: {}]   ;;  %s2868_s7 = inlined_call_operand.hbm [shape: f32[256,768], index: 7, kind: output, shape index: {}]  }
   0x1   :  { %13 = vsyncpa [#allocation4], 0 }
   0x2   :  { %15 = vsyncpa [#allocation4 + $0x1], 0  ;;  %s2344_s24 = smov 0   ;;  %s2346_s25 = smov 0  }
   0x3   :  { %s2348_s26 = smov 0   ;;  %s2350_s27 = smov 0  }
   0x4 LB: > { %s2365_s28 = sadd.s32 4294967295, %s2295_s27   ;;  %s1669_s29 = sadd.s32 4294967294, %s2295_s27   ;;  %s2295_s27 = sphi %s2350_s27, %s2884_s27   ;;  %s2291_s26 = sphi %s2348_s26, %s2883_s26   ;;  %s2287_s25 = sphi %s2346_s25, %s2882_s25   ;;  %s2283_s24 = sphi %s2344_s24, %s2881_s24  }
   0x5   : > { %s2369_s30 = sadd.s32 1, %s2295_s27   ;;  %s180_s8 = sadd.s32 1, %s2291_s26 }
   0x6   : > { %s177_s9 = ssub.s32 %s2295_s27, %s2369_s30  ;;  %p190_p0 = scmp.ne.s32.totalorder %s2291_s26, %s2287_s25 }
   0x7   : > { %p178_p1 = scmp.eq.s32.totalorder %s177_s9, 0  ;;  %p191_p2 = scmp.eq.s32.totalorder %s2365_s28, 1 }
   0x8   : > { %p196_p3 = scmp.ne.s32.totalorder %s2287_s25, %s2283_s24  ;;  %p197_p4 = scmp.eq.s32.totalorder %s1669_s29, 1 }
   0x9   : > { %s2380_s10 = scalar_select %p178_p1, %s2291_s26, %s180_s8  }
   0xa   : > { %p2382_p5 = por %p191_p2, %p190_p0  ;;  %p2386_p6 = por %p197_p4, %p196_p3 }
   0xb   : > { %p1670_p7 = scmp.ge.s32.totalorder %s2295_s27, 1  ;;  %p204_p8 = scmp.lt.s32.totalorder %s2295_s27, 3 }
   0xc   : > { %s2872_s11 = scalar_select %p2382_p5, 1, 0 }
   0xd   : > { %s2873_s12 = scalar_select %p2386_p6, 1, 0 }
   0xe   : > { %p2869_p9 = scmp.eq.s32.totalorder %s2365_s28, 0  ;;  %p2393_p10 = pnand %p1670_p7, %p204_p8 }
   0xf   : > { %s2297_s14 = smov [#allocation2]   ;;  %s2201_s19 = scalar_lea.hbm %s2866_s5, 6144 }
  0x10   : > { %s2874_s13 = scalar_select %p2393_p10, 1, 0 }
  0x11   : > { %s228_s15 = sshll.u32 %s2297_s14, 4  ;;  %p1868_p11 = pneg %p2393_p10  ;;  %s229_s15 = int_to_ptr.vmem [resolvable:$true] %s228_s15 }
  0x12   : > { %p2202_p13 = scmp.ne.s32.totalorder %s2866_s5, %s2201_s19  ;;  %p2208_p3 = scmp.lt.u32.totalorder %s2201_s19, %s2866_s5 }
  0x13   : > { %p2401_p12 = pnand %p2869_p9, %p1868_p11 }
  0x15   : > { %p2203_p0 = pneg %p2401_p12 }
  0x17   : > { %p2204_p1 = pnand %p2203_p0, %p2202_p13 }
  0x19   : > { %p2205_p2 = pneg %p2204_p1 }
  0x1b   : > { %p2210_p4 = pnand %p2208_p3, %p2205_p2 }
  0x1d   : > { %2213 = shalt.err (!%p2210_p4)
}
  0x1e   : > { %s2214_s29 = scalar_lea.vmem %s229_s15, 6144  ;;  %p2222_p9 = scmp.lt.s32.totalorder %s229_s15, %s229_s15 }
  0x1f   : > { %p2215_p7 = scmp.ne.s32.totalorder %s229_s15, %s2214_s29  ;;  %p2223_p6 = scmp.lt.s32.totalorder %s2214_s29, %s2214_s29 }
  0x21   : > { %p2217_p8 = pnand %p2215_p7, %p2203_p0  ;;  %p2224_p5 = por %p2223_p6, %p2222_p9 }
  0x23   : > { %p2218_p11 = pneg %p2217_p8 }
  0x25   : > { %p2225_p10 = pnand %p2224_p5, %p2218_p11 }
  0x27   : > { %2228 = shalt.err (!%p2225_p10)
}
  0x28   : > { %s2298_s8 = smov 384   ;;  %s2299_s9 = smov 24  }
  0x29   : > { %1871 = dma.hbm_to_vmem [thread:$0]  (!%p2401_p12), %s2866_s5, 6144, %s229_s15, [#allocation3], %s2298_s8, %s2298_s8, %s2299_s9  }
  0x2a   : > { %p2876_p13 = scmp.ne.s32.totalorder %s2874_s13, 0 }
  0x2b   : > { %p2877_p1 = scmp.eq.s32.totalorder (!%p2876_p13), %s2365_s28, 0 }
  0x2c   : > { %256 = sbr.rel (%p2876_p13) target bundleno = 851 (0x353), region = 48 }
  0x33   : > { %2274 = dma.done.wait (%p2877_p1), [#allocation3], 6144   ;;  %p2878_p0 = pmov %p2877_p1 }
  0x34   : > { %s1675_s18 = sshll.u32 %s2365_s28, 4  ;;  %v1917_v0 = vld [vmem:[%s2862_s1] sm:$0xff]   ;;  %v1918_v1 = vld [vmem:[%s2862_s1 + $0x8] sm:$0xff]   ;;  %v1919_v2 = vld [vmem:[%s2862_s1 + $0x10] sm:$0xff]   ;;  %vm391_vm0 = vcmask 523264   ;;  %s285_s22 = sand.u32 1, %s2287_s25  }
  0x35   : > { %2276 = vsyncadd (%p2878_p0), [#allocation3], 4294961152  ;;  %p289_p5 = scmp.lt.s32.totalorder %s1675_s18, 31  ;;  %1788 = vmatprep.subr.bf16.mxu0 %v1917_v0  ;;  %v1920_v4 = vld [vmem:[%s2862_s1 + $0x18] sm:$0xff]   ;;  %v1929_v5 = vld [vmem:[%s2864_s3] sm:$0xff]   ;;  %s1860_s29 = smul.u32 768, %s285_s22 }
  0x36   : > { %1789 = vmatpush3.bf16.msra.mxu0 %v1917_v0  ;;  %v1930_v6 = vld [vmem:[%s2864_s3 + $0x8] sm:$0xff]   ;;  %1812 = vmatprep.subr.bf16.mxu1 %v1929_v5  ;;  %v1931_v9 = vld [vmem:[%s2864_s3 + $0x10] sm:$0xff]   ;;  %v1932_v10 = vld [vmem:[%s2864_s3 + $0x18] sm:$0xff]   ;;  %s1861_s9 = smul.u32 12288, %s2365_s28  ;;  %s2820_s28 = scalar_lea.sflag [#allocation4], %s285_s22 }
  0x37   : > { %s2886_s18 = smov (!%p289_p5, %s1675_s18), 31  ;;  %1790 = vmatprep.subr.bf16.mxu0 %v1918_v1  ;;  %1813 = vmatpush3.bf16.msra.mxu1 %v1929_v5  ;;  %v1933_v13 = vld [vmem:[%s2864_s3 + $0x20] sm:$0xff]   ;;  %v1934_v14 = vld [vmem:[%s2864_s3 + $0x28] sm:$0xff]   ;;  %v1935_v18 = vld [vmem:[%s2864_s3 + $0x30] sm:$0xff]   ;;  %s2622_s8 = scalar_lea.vmem [#allocation5], %s1860_s29 }
  0x38   : > { %s1676_s19 = sshll.u32 %s2886_s18, 2  ;;  %1814 = vmatprep.subr.bf16.mxu1 %v1930_v6  ;;  %v1936_v19 = vld [vmem:[%s2864_s3 + $0x38] sm:$0xff]   ;;  %v1942_v22 = vld [vmem:[#allocation2 + $0xc] ss:$24 sps:$4 sm:$0xff]   ;;  %v1943_v24 = vld [vmem:[#allocation2 + $0x30] ss:$24 sps:$4 sm:$0xff]  }
  0x39   : > { %s2437_s23 = scalar_lea.vmem %s2861_s0, %s1676_s19  ;;  %v1937_v20 = vld [vmem:[#allocation2] ss:$24 sps:$4 sm:$0xff]   ;;  %v1939_v21 = vld [vmem:[#allocation2 + $0x4] ss:$24 sps:$4 sm:$0xff]   ;;  %v1945_v23 = vld [vmem:[#allocation2 + $0x34] ss:$24 sps:$4 sm:$0xff]   ;;  %s2811_s19 = scalar_lea.hbm %s2868_s7, %s1861_s9 }
  0x3a   : > { %v1921_v3 = vld [vmem:[%s2437_s23] sm:$0xff]   ;;  %1791 = vmatpush3.bf16.msra.mxu0 %v1918_v1  ;;  %v1922_v7 = vld [vmem:[%s2437_s23 + $0x8] sm:$0xff]   ;;  %v1923_v8 = vld [vmem:[%s2437_s23 + $0x10] sm:$0xff]   ;;  %s1595_s14 = sshll.u32 %s2622_s8, 4  ;;  %p2879_p9 = scmp.ne.s32.totalorder %s2872_s11, 0  ;;  %s2814_s14 = int_to_ptr.vmem [resolvable:$true] %s1595_s14 }
  0x3b   : > { %1796 = vmatprep.mubr.msk.bf16.mxu0 %vm391_vm0, %v1921_v3  ;;  %1792 = vmatprep.subr.bf16.mxu0 %v1919_v2  ;;  %v1924_v11 = vld [vmem:[%s2437_s23 + $0x18] sm:$0xff]   ;;  %v1925_v12 = vld [vmem:[%s2437_s23 + $0x20] sm:$0xff]   ;;  %v1926_v15 = vld [vmem:[%s2437_s23 + $0x28] sm:$0xff]   ;;  %s2301_s20 = smov [#allocation5]  }
  0x3c   : > { %1815 = vmatpush3.bf16.msra.mxu1 %v1930_v6  ;;  %v1927_v16 = vld [vmem:[%s2437_s23 + $0x30] sm:$0xff]   ;;  %v1928_v17 = vld [vmem:[%s2437_s23 + $0x38] sm:$0xff]   ;;  %v2488_v33 = vld [vmem:[%s2863_s2] ss:$0 sm:$0xff]  ;;  %s2229_s23 = scalar_lea.vmem %s2814_s14, 12288  ;;  %s2233_s16 = sshll.u32 %s2301_s20, 4  ;;  %s2234_s16 = int_to_ptr.vmem [resolvable:$false] %s2233_s16 }
  0x3d   : > { %1816 = vmatprep.subr.bf16.mxu1 %v1931_v9  ;;  %v1951_v25 = vld [vmem:[#allocation2 + $0x64] ss:$24 sps:$4 sm:$0xff]   ;;  %v1949_v26 = vld [vmem:[#allocation2 + $0x60] ss:$24 sps:$4 sm:$0xff]   ;;  %v1957_v27 = vld [vmem:[#allocation2 + $0x94] ss:$24 sps:$4 sm:$0xff]   ;;  %p2230_p6 = scmp.ne.s32.totalorder %s2814_s14, %s2229_s23  ;;  %p2236_p2 = scmp.lt.s32.totalorder %s2814_s14, %s2234_s16 }
  0x3e   : > { %1793 = vmatpush3.bf16.msra.mxu0 %v1919_v2  ;;  %v1955_v28 = vld [vmem:[#allocation2 + $0x90] ss:$24 sps:$4 sm:$0xff]   ;;  %v1963_v29 = vld [vmem:[#allocation2 + $0xc4] ss:$24 sps:$4 sm:$0xff]   ;;  %v1961_v30 = vld [vmem:[#allocation2 + $0xc0] ss:$24 sps:$4 sm:$0xff]  }
  0x3f   : > { %1794 = vmatprep.subr.bf16.mxu0 %v1920_v4  ;;  %v1969_v31 = vld [vmem:[#allocation2 + $0xf4] ss:$24 sps:$4 sm:$0xff]   ;;  %v1967_v32 = vld [vmem:[#allocation2 + $0xf0] ss:$24 sps:$4 sm:$0xff]   ;;  %p2231_p10 = pnand %p2230_p6, %p2879_p9  ;;  %s2235_s21 = scalar_lea.vmem %s2234_s16, 24576 }
  0x40   : > { %1817 = vmatpush3.bf16.msra.mxu1 %v1931_v9  ;;  %v1940_v49 = vld [vmem:[#allocation2 + $0x8] ss:$24 sps:$4 sm:$0xff]   ;;  %v1948_v52 = vld [vmem:[#allocation2 + $0x3c] ss:$24 sps:$4 sm:$0xff]   ;;  %v1946_v60 = vld [vmem:[#allocation2 + $0x38] ss:$24 sps:$4 sm:$0xff]   ;;  %p2237_p3 = scmp.lt.s32.totalorder %s2235_s21, %s2229_s23 }
  0x41   : > { %1818 = vmatprep.subr.bf16.mxu1 %v1932_v10  ;;  %v1954_v62 = vld [vmem:[#allocation2 + $0x6c] ss:$24 sps:$4 sm:$0xff]   ;;  %v1952_v3 = vld [vmem:[#allocation2 + $0x68] ss:$24 sps:$4 sm:$0xff]   ;;  %v1960_v6 = vld [vmem:[#allocation2 + $0x9c] ss:$24 sps:$4 sm:$0xff]   ;;  %p2232_p12 = pneg %p2231_p10 }
  0x42   : > { %1795 = vmatpush3.bf16.msra.mxu0 %v1920_v4  ;;  %p2238_p4 = por %p2237_p3, %p2236_p2 }
  0x43   : > { %1049 = vmatprep.subr.bf16.mxu0 %v1939_v21  ;;  %v1964_v21 = vld [vmem:[#allocation2 + $0xc8] ss:$24 sps:$4 sm:$0xff]  }
  0x44   : > { %1819 = vmatpush3.bf16.msra.mxu1 %v1932_v10  ;;  %p2239_p7 = pnand %p2238_p4, %p2232_p12 }
  0x45   : > { %1797 = vmatmul.mubr.msk.bf16.vlgmr.msra.gmra.mrb[0].mxu0 %vm391_vm0, %v1922_v7  ;;  %1820 = vmatprep.subr.bf16.mxu1 %v1933_v13 }
  0x46   : > { %1800 = vmatprep.mubr.msk.bf16.mxu0 %vm391_vm0, %v1923_v8  ;;  %1050 = vmatpush1.bf16.msra.mxu0 %v1937_v20 }
  0x47   : > { %1051 = vmatprep.subr.bf16.mxu0 %v1945_v23 }
  0x48   : > { %1821 = vmatpush3.bf16.msra.mxu1 %v1933_v13 }
  0x49   : > { %1822 = vmatprep.subr.bf16.mxu1 %v1934_v14 }
  0x4a   : > { %1052 = vmatpush1.bf16.msra.mxu0 %v1943_v24  ;;  %v1972_v24 = vld [vmem:[#allocation2 + $0xfc] ss:$24 sps:$4 sm:$0xff]  }
  0x4b   : > { %1053 = vmatprep.subr.bf16.mxu0 %v1951_v25 }
  0x4c   : > { %1823 = vmatpush3.bf16.msra.mxu1 %v1934_v14  ;;  %v1958_v14 = vld [vmem:[#allocation2 + $0x98] ss:$24 sps:$4 sm:$0xff]  }
  0x4d   : > { %1801 = vmatmul.mubr.msk.bf16.gmra.mrb[4].mxu0 %vm391_vm0, %v1924_v11  ;;  %1824 = vmatprep.subr.bf16.mxu1 %v1935_v18 }
  0x4e   : > { %1804 = vmatprep.mubr.msk.bf16.mxu0 %vm391_vm0, %v1925_v12  ;;  %1054 = vmatpush1.bf16.msra.mxu0 %v1949_v26 }
  0x4f   : > { %1055 = vmatprep.subr.bf16.mxu0 %v1957_v27 }
  0x50   : > { %1825 = vmatpush3.bf16.msra.mxu1 %v1935_v18 }
  0x51   : > { %1826 = vmatprep.subr.bf16.mxu1 %v1936_v19 }
  0x52   : > { %1056 = vmatpush1.bf16.msra.mxu0 %v1955_v28 }
  0x53   : > { %1057 = vmatprep.subr.bf16.mxu0 %v1963_v29 }
  0x54   : > { %1827 = vmatpush3.bf16.msra.mxu1 %v1936_v19 }
  0x55   : > { %1805 = vmatmul.mubr.msk.bf16.gmra.mrb[8].mxu0 %vm391_vm0, %v1926_v15  ;;  %1162 = vmatprep.subr.bf16.mxu1 %v1942_v22 }
  0x56   : > { %1808 = vmatprep.mubr.msk.bf16.mxu0 %vm391_vm0, %v1927_v16  ;;  %1058 = vmatpush1.bf16.msra.mxu0 %v1961_v30  ;;  %v1966_v16 = vld [vmem:[#allocation2 + $0xcc] ss:$24 sps:$4 sm:$0xff]  }
  0x57   : > { %1059 = vmatprep.subr.bf16.mxu0 %v1969_v31 }
  0x5a   : > { %1060 = vmatpush1.bf16.msra.mxu0 %v1967_v32  ;;  %v1970_v32 = vld [vmem:[#allocation2 + $0xf8] ss:$24 sps:$4 sm:$0xff]  }
  0x5d   : > { %1809 = vmatmul.mubr.msk.bf16.gmra.mrb[12].mxu0 %vm391_vm0, %v1928_v17 }
 0x118   : > { %v1798_v34 = vpop.f32.mrb[0].mxu0 }
 0x119   : > { %v459_v35 = vadd.f32 %v1798_v34, %v2488_v33  ;;  %v450_v36 = vpop.f32.mrb[1].mxu0 }
 0x11a   : > { %v451_v37 = vadd.f32 %v2488_v33, %v450_v36  ;;  %v1799_v38 = vpop.f32.mrb[2].mxu0 }
 0x11b   : > { %v462_v39 = vadd.f32 %v1799_v38, %v2488_v33  ;;  %v453_v40 = vpop.f32.mrb[3].mxu0  ;;  %v515_v42 = vmax.f32 %v459_v35, 0.0  ;;  %v1975_v38 = vld [vmem:[#allocation2 + $0x124] ss:$24 sps:$4 sm:$0xff]  }
 0x11c   : > { %v454_v41 = vadd.f32 %v2488_v33, %v453_v40  ;;  %v513_v44 = vmax.f32 %v451_v37, 0.0  ;;  %v1973_v40 = vld [vmem:[#allocation2 + $0x120] ss:$24 sps:$4 sm:$0xff]   ;;  %1061 = vmatprep.subr.bf16.mxu0 %v1975_v38 }
 0x11d   : > { %v516_v43 = vmax.f32 %v462_v39, 0.0  ;;  %v1978_v39 = vld [vmem:[#allocation2 + $0x12c] ss:$24 sps:$4 sm:$0xff]   ;;  %1062 = vmatpush1.bf16.msra.mxu0 %v1973_v40 }
 0x11e   : > { %v514_v45 = vmax.f32 %v454_v41, 0.0  ;;  %v1976_v41 = vld [vmem:[#allocation2 + $0x128] ss:$24 sps:$4 sm:$0xff]  }
 0x11f   : > { %v530_v46 = vpack.c.bf16 %v516_v43, %v515_v42  ;;  %v1981_v42 = vld [vmem:[#allocation2 + $0x154] ss:$24 sps:$4 sm:$0xff]   ;;  %v1979_v43 = vld [vmem:[#allocation2 + $0x150] ss:$24 sps:$4 sm:$0xff]  }
 0x120   : > { %v1802_v47 = vpop.f32.mrb[4].mxu0  ;;  %v529_v48 = vpack.c.bf16 %v514_v45, %v513_v44  ;;  %v1982_v44 = vld [vmem:[#allocation2 + $0x158] ss:$24 sps:$4 sm:$0xff]   ;;  %1063 = vmatprep.subr.bf16.mxu0 %v1981_v42  ;;  %v2300_v45 = vmov 0  }
 0x121   : > { %v475_v50 = vadd.f32 %v1802_v47, %v2488_v33  ;;  %v466_v51 = vpop.f32.mrb[5].mxu0  ;;  %1064 = vmatpush1.bf16.msra.mxu0 %v1979_v43  ;;  %1081 = vmatprep.mubr.bf16.mxu0 %v2300_v45  ;;  %v2511_v47 = vld [vmem:[%s2865_s4] ss:$0 sm:$0xff] }
 0x122   : > { %v467_v53 = vadd.f32 %v2488_v33, %v466_v51  ;;  %1828 = vmatprep.mubr.bf16.mxu1 %v529_v48  ;;  %v1803_v54 = vpop.f32.mrb[6].mxu0 }
 0x123   : > { %v519_v55 = vmax.f32 %v475_v50, 0.0  ;;  %v478_v56 = vadd.f32 %v1803_v54, %v2488_v33  ;;  %1829 = vmatmul.mubr.bf16.vlgmr.msra.gmra.mrb[0].mxu1 %v530_v46  ;;  %v469_v57 = vpop.f32.mrb[7].mxu0  ;;  %v1987_v46 = vld [vmem:[#allocation2 + $0x14] ss:$24 sps:$4 sm:$0xff]  }
 0x124   : > { %v517_v58 = vmax.f32 %v467_v53, 0.0  ;;  %v470_v59 = vadd.f32 %v2488_v33, %v469_v57  ;;  %1163 = vmatpush1.bf16.msra.mxu1 %v1940_v49  ;;  %1275 = vmatprep.subr.bf16.mxu0 %v1987_v46 }
 0x125   : > { %v520_v61 = vmax.f32 %v478_v56, 0.0  ;;  %1164 = vmatprep.subr.bf16.mxu1 %v1948_v52 }
 0x126   : > { %v518_v63 = vmax.f32 %v470_v59, 0.0 }
 0x127   : > { %v532_v0 = vpack.c.bf16 %v520_v61, %v519_v55  ;;  %v1985_v61 = vld [vmem:[#allocation2 + $0x10] ss:$24 sps:$4 sm:$0xff]  }
 0x128   : > { %v531_v1 = vpack.c.bf16 %v518_v63, %v517_v58  ;;  %v1806_v2 = vpop.f32.mrb[8].mxu0  ;;  %1165 = vmatpush1.bf16.msra.mxu1 %v1946_v60 }
 0x129   : > { %v491_v4 = vadd.f32 %v1806_v2, %v2488_v33  ;;  %v482_v5 = vpop.f32.mrb[9].mxu0  ;;  %1166 = vmatprep.subr.bf16.mxu1 %v1954_v62 }
 0x12a   : > { %1832 = vmatprep.mubr.bf16.mxu1 %v531_v1  ;;  %v483_v7 = vadd.f32 %v2488_v33, %v482_v5  ;;  %v1807_v8 = vpop.f32.mrb[10].mxu0 }
 0x12b   : > { %1833 = vmatmul.mubr.bf16.gmra.mrb[4].mxu1 %v532_v0  ;;  %v523_v9 = vmax.f32 %v491_v4, 0.0  ;;  %v494_v10 = vadd.f32 %v1807_v8, %v2488_v33  ;;  %v485_v11 = vpop.f32.mrb[11].mxu0  ;;  %v1990_v0 = vld [vmem:[#allocation2 + $0x44] ss:$24 sps:$4 sm:$0xff]   ;;  %v1988_v8 = vld [vmem:[#allocation2 + $0x40] ss:$24 sps:$4 sm:$0xff]  }
 0x12c   : > { %v521_v12 = vmax.f32 %v483_v7, 0.0  ;;  %v486_v13 = vadd.f32 %v2488_v33, %v485_v11  ;;  %1167 = vmatpush1.bf16.msra.mxu1 %v1952_v3  ;;  %v1993_v11 = vld [vmem:[#allocation2 + $0x74] ss:$24 sps:$4 sm:$0xff]  }
 0x12d   : > { %v524_v15 = vmax.f32 %v494_v10, 0.0  ;;  %1168 = vmatprep.subr.bf16.mxu1 %v1960_v6 }
 0x12e   : > { %v522_v17 = vmax.f32 %v486_v13, 0.0 }
 0x12f   : > { %v534_v18 = vpack.c.bf16 %v524_v15, %v523_v9 }
 0x130   : > { %v533_v19 = vpack.c.bf16 %v522_v17, %v521_v12  ;;  %v1810_v20 = vpop.f32.mrb[12].mxu0  ;;  %1169 = vmatpush1.bf16.msra.mxu1 %v1958_v14  ;;  %v1991_v17 = vld [vmem:[#allocation2 + $0x70] ss:$24 sps:$4 sm:$0xff]  }
 0x131   : > { %v507_v22 = vadd.f32 %v1810_v20, %v2488_v33  ;;  %v498_v23 = vpop.f32.mrb[13].mxu0  ;;  %1170 = vmatprep.subr.bf16.mxu1 %v1966_v16  ;;  %v1996_v20 = vld [vmem:[#allocation2 + $0xa4] ss:$24 sps:$4 sm:$0xff]  }
 0x132   : > { %1836 = vmatprep.mubr.bf16.mxu1 %v533_v19  ;;  %v499_v25 = vadd.f32 %v2488_v33, %v498_v23  ;;  %v1811_v26 = vpop.f32.mrb[14].mxu0 }
 0x133   : > { %1837 = vmatmul.mubr.bf16.gmra.mrb[8].mxu1 %v534_v18  ;;  %v527_v27 = vmax.f32 %v507_v22, 0.0  ;;  %v510_v28 = vadd.f32 %v1811_v26, %v2488_v33  ;;  %v501_v29 = vpop.f32.mrb[15].mxu0 }
 0x134   : > { %v525_v30 = vmax.f32 %v499_v25, 0.0  ;;  %v502_v31 = vadd.f32 %v2488_v33, %v501_v29  ;;  %1171 = vmatpush1.bf16.msra.mxu1 %v1964_v21  ;;  %v1984_v33 = vld [vmem:[#allocation2 + $0x15c] ss:$24 sps:$4 sm:$0xff]  }
 0x135   : > { %v528_v34 = vmax.f32 %v510_v28, 0.0  ;;  %1172 = vmatprep.subr.bf16.mxu1 %v1972_v24  ;;  %v1994_v28 = vld [vmem:[#allocation2 + $0xa0] ss:$24 sps:$4 sm:$0xff]  }
 0x136   : > { %v526_v35 = vmax.f32 %v502_v31, 0.0 }
 0x137   : > { %v536_v36 = vpack.c.bf16 %v528_v34, %v527_v27 }
 0x138   : > { %v535_v37 = vpack.c.bf16 %v526_v35, %v525_v30  ;;  %1173 = vmatpush1.bf16.msra.mxu1 %v1970_v32  ;;  %v1999_v30 = vld [vmem:[#allocation2 + $0xd4] ss:$24 sps:$4 sm:$0xff]  }
 0x139   : > { %1174 = vmatprep.subr.bf16.mxu1 %v1978_v39  ;;  %v2002_v39 = vld [vmem:[#allocation2 + $0x104] ss:$24 sps:$4 sm:$0xff]  }
 0x13a   : > { %1840 = vmatprep.mubr.bf16.mxu1 %v535_v37 }
 0x13b   : > { %1841 = vmatmul.mubr.bf16.gmra.mrb[12].mxu1 %v536_v36  ;;  %v1997_v36 = vld [vmem:[#allocation2 + $0xd0] ss:$24 sps:$4 sm:$0xff]  }
 0x13c   : > { %1175 = vmatpush1.bf16.msra.mxu1 %v1976_v41  ;;  %1194 = vmatprep.mubr.bf16.mxu1 %v2300_v45 }
 0x13d   : > { %1176 = vmatprep.subr.bf16.mxu1 %v1984_v33 }
 0x140   : > { %1177 = vmatpush1.bf16.msra.mxu1 %v1982_v44 }
 0x141   : > { %1844 = vmatprep.subr.bf16.mxu1 %v1987_v46 }
 0x1f6   : > { %v1830_v48 = vpop.f32.mrb[0].mxu1 }
 0x1f7   : > { %v651_v49 = vadd.f32 %v1830_v48, %v2511_v47  ;;  %v642_v50 = vpop.f32.mrb[1].mxu1  ;;  %v2000_v48 = vld [vmem:[#allocation2 + $0x100] ss:$24 sps:$4 sm:$0xff]  }
 0x1f8   : > { %v643_v51 = vadd.f32 %v2511_v47, %v642_v50  ;;  %v1831_v52 = vpop.f32.mrb[2].mxu1  ;;  %v2005_v50 = vld [vmem:[#allocation2 + $0x134] ss:$24 sps:$4 sm:$0xff]  }
 0x1f9   : > { %v654_v53 = vadd.f32 %v1831_v52, %v2511_v47  ;;  %v645_v54 = vpop.f32.mrb[3].mxu1  ;;  %v707_v56 = vmax.f32 %v651_v49, 0.0 }
 0x1fa   : > { %v646_v55 = vadd.f32 %v2511_v47, %v645_v54  ;;  %v705_v58 = vmax.f32 %v643_v51, 0.0  ;;  %v2003_v54 = vld [vmem:[#allocation2 + $0x130] ss:$24 sps:$4 sm:$0xff]  }
 0x1fb   : > { %v708_v57 = vmax.f32 %v654_v53, 0.0 }
 0x1fc   : > { %v706_v59 = vmax.f32 %v646_v55, 0.0  ;;  %v2008_v55 = vld [vmem:[#allocation2 + $0x164] ss:$24 sps:$4 sm:$0xff]  }
 0x1fd   : > { %v2517_v60 = vpack.c.bf16 %v708_v57, %v707_v56  ;;  %v779_v56 = vlaneseq }
 0x1fe   : > { %v2519_v62 = vpack.c.bf16 %v706_v59, %v705_v58  ;;  %v1834_v63 = vpop.f32.mrb[4].mxu1 }
 0x1ff   : > { %v667_v1 = vadd.f32 %v1834_v63, %v2511_v47  ;;  %v658_v2 = vpop.f32.mrb[5].mxu1  ;;  %v2581_v57 = vshrl.u32 %v779_v56, 7 }
 0x200   : > { %v659_v3 = vadd.f32 %v2511_v47, %v658_v2  ;;  %1082 = vmatmul.mubr.bf16.vlgmr.msra.gmra.mrb[16].mxu0 %v2519_v62  ;;  %1195 = vmatmul.mubr.bf16.vlgmr.msra.gmra.mrb[16].mxu1 %v2519_v62  ;;  %v1835_v4 = vpop.f32.mrb[6].mxu1 }
 0x201   : > { %v711_v5 = vmax.f32 %v667_v1, 0.0  ;;  %1276 = vmatpush1.bf16.msra.mxu0 %v1985_v61  ;;  %v670_v6 = vadd.f32 %v1835_v4, %v2511_v47  ;;  %v661_v7 = vpop.f32.mrb[7].mxu1  ;;  %1091 = vmatprep.mubr.bf16.mxu0 %v2300_v45  ;;  %v781_v58 = vsub.s32 0, %v2581_v57  ;;  %v789_v59 = vsub.s32 2, %v2581_v57 }
 0x202   : > { %v709_v9 = vmax.f32 %v659_v3, 0.0  ;;  %v662_v10 = vadd.f32 %v2511_v47, %v661_v7  ;;  %1204 = vmatprep.mubr.bf16.mxu1 %v2300_v45  ;;  %1277 = vmatprep.subr.bf16.mxu0 %v1990_v0 }
 0x203   : > { %v712_v12 = vmax.f32 %v670_v6, 0.0  ;;  %1852 = vmatpush1.bf16.msra.mxu1 %v1985_v61  ;;  %v785_v61 = vsub.s32 1, %v2581_v57 }
 0x204   : > { %v710_v13 = vmax.f32 %v662_v10, 0.0  ;;  %1845 = vmatprep.subr.bf16.mxu1 %v1990_v0 }
 0x205   : > { %v2529_v14 = vpack.c.bf16 %v712_v12, %v711_v5  ;;  %1278 = vmatpush1.bf16.msra.mxu0 %v1988_v8 }
 0x206   : > { %v2531_v15 = vpack.c.bf16 %v710_v13, %v709_v9  ;;  %v1838_v16 = vpop.f32.mrb[8].mxu1  ;;  %1279 = vmatprep.subr.bf16.mxu0 %v1993_v11 }
 0x207   : > { %v683_v18 = vadd.f32 %v1838_v16, %v2511_v47  ;;  %v674_v19 = vpop.f32.mrb[9].mxu1  ;;  %1853 = vmatpush1.bf16.msra.mxu1 %v1988_v8 }
 0x208   : > { %1092 = vmatmul.mubr.bf16.gmra.mrb[20].mxu0 %v2517_v60  ;;  %1205 = vmatmul.mubr.bf16.gmra.mrb[20].mxu1 %v2517_v60  ;;  %v675_v21 = vadd.f32 %v2511_v47, %v674_v19  ;;  %v1839_v22 = vpop.f32.mrb[10].mxu1 }
 0x209   : > { %v715_v23 = vmax.f32 %v683_v18, 0.0  ;;  %1101 = vmatprep.mubr.bf16.mxu0 %v2300_v45  ;;  %1214 = vmatprep.mubr.bf16.mxu1 %v2300_v45  ;;  %v686_v24 = vadd.f32 %v1839_v22, %v2511_v47  ;;  %v677_v25 = vpop.f32.mrb[11].mxu1 }
 0x20a   : > { %v713_v26 = vmax.f32 %v675_v21, 0.0  ;;  %1280 = vmatpush1.bf16.msra.mxu0 %v1991_v17  ;;  %v678_v27 = vadd.f32 %v2511_v47, %v677_v25  ;;  %1846 = vmatprep.subr.bf16.mxu1 %v1993_v11 }
 0x20b   : > { %v716_v29 = vmax.f32 %v686_v24, 0.0  ;;  %1281 = vmatprep.subr.bf16.mxu0 %v1996_v20  ;;  %1854 = vmatpush1.bf16.msra.mxu1 %v1991_v17 }
 0x20c   : > { %v714_v31 = vmax.f32 %v678_v27, 0.0  ;;  %1847 = vmatprep.subr.bf16.mxu1 %v1996_v20 }
 0x20d   : > { %v2541_v32 = vpack.c.bf16 %v716_v29, %v715_v23 }
 0x20e   : > { %v2543_v34 = vpack.c.bf16 %v714_v31, %v713_v26  ;;  %1282 = vmatpush1.bf16.msra.mxu0 %v1994_v28  ;;  %v1842_v35 = vpop.f32.mrb[12].mxu1 }
 0x20f   : > { %v699_v37 = vadd.f32 %v1842_v35, %v2511_v47  ;;  %1283 = vmatprep.subr.bf16.mxu0 %v1999_v30  ;;  %v690_v38 = vpop.f32.mrb[13].mxu1  ;;  %1855 = vmatpush1.bf16.msra.mxu1 %v1994_v28 }
 0x210   : > { %1102 = vmatmul.mubr.bf16.gmra.mrb[24].mxu0 %v2531_v15  ;;  %1215 = vmatmul.mubr.bf16.gmra.mrb[24].mxu1 %v2531_v15  ;;  %v691_v40 = vadd.f32 %v2511_v47, %v690_v38  ;;  %v1843_v41 = vpop.f32.mrb[14].mxu1 }
 0x211   : > { %1111 = vmatprep.mubr.bf16.mxu0 %v2300_v45  ;;  %1224 = vmatprep.mubr.bf16.mxu1 %v2300_v45  ;;  %v719_v42 = vmax.f32 %v699_v37, 0.0  ;;  %v702_v33 = vadd.f32 %v1843_v41, %v2511_v47  ;;  %v693_v43 = vpop.f32.mrb[15].mxu1 }
 0x212   : > { %v717_v44 = vmax.f32 %v691_v40, 0.0  ;;  %1284 = vmatpush1.bf16.msra.mxu0 %v1997_v36  ;;  %v694_v46 = vadd.f32 %v2511_v47, %v693_v43  ;;  %1848 = vmatprep.subr.bf16.mxu1 %v1999_v30  ;;  %v2006_v47 = vld [vmem:[#allocation2 + $0x160] ss:$24 sps:$4 sm:$0xff]  }
 0x213   : > { %v720_v49 = vmax.f32 %v702_v33, 0.0  ;;  %1285 = vmatprep.subr.bf16.mxu0 %v2002_v39  ;;  %1856 = vmatpush1.bf16.msra.mxu1 %v1997_v36 }
 0x214   : > { %v718_v51 = vmax.f32 %v694_v46, 0.0  ;;  %1849 = vmatprep.subr.bf16.mxu1 %v2002_v39 }
 0x215   : > { %v728_v52 = vpack.c.bf16 %v720_v49, %v719_v42 }
 0x216   : > { %v727_v53 = vpack.c.bf16 %v718_v51, %v717_v44  ;;  %1286 = vmatpush1.bf16.msra.mxu0 %v2000_v48 }
 0x217   : > { %1287 = vmatprep.subr.bf16.mxu0 %v2005_v50  ;;  %1857 = vmatpush1.bf16.msra.mxu1 %v2000_v48 }
 0x218   : > { %1112 = vmatmul.mubr.bf16.gmra.mrb[28].mxu0 %v2529_v14  ;;  %1225 = vmatmul.mubr.bf16.gmra.mrb[28].mxu1 %v2529_v14 }
 0x219   : > { %1121 = vmatprep.mubr.bf16.mxu0 %v2300_v45  ;;  %1234 = vmatprep.mubr.bf16.mxu1 %v2300_v45 }
 0x21a   : > { %1288 = vmatpush1.bf16.msra.mxu0 %v2003_v54  ;;  %1850 = vmatprep.subr.bf16.mxu1 %v2005_v50 }
 0x21b   : > { %1289 = vmatprep.subr.bf16.mxu0 %v2008_v55  ;;  %1858 = vmatpush1.bf16.msra.mxu1 %v2003_v54 }
 0x21c   : > { %1851 = vmatprep.subr.bf16.mxu1 %v2008_v55 }
 0x21e   : > { %1290 = vmatpush1.bf16.msra.mxu0 %v2006_v47 }
 0x21f   : > { %1859 = vmatpush1.bf16.msra.mxu1 %v2006_v47 }
 0x220   : > { %1122 = vmatmul.mubr.bf16.gmra.mrb[32].mxu0 %v2543_v34  ;;  %1235 = vmatmul.mubr.bf16.gmra.mrb[32].mxu1 %v2543_v34 }
 0x221   : > { %1131 = vmatprep.mubr.bf16.mxu0 %v2300_v45  ;;  %1244 = vmatprep.mubr.bf16.mxu1 %v2300_v45 }
 0x228   : > { %1132 = vmatmul.mubr.bf16.gmra.mrb[36].mxu0 %v2541_v32  ;;  %1245 = vmatmul.mubr.bf16.gmra.mrb[36].mxu1 %v2541_v32 }
 0x229   : > { %1141 = vmatprep.mubr.bf16.mxu0 %v2300_v45  ;;  %1254 = vmatprep.mubr.bf16.mxu1 %v2300_v45 }
 0x230   : > { %1142 = vmatmul.mubr.bf16.gmra.mrb[40].mxu0 %v727_v53  ;;  %1255 = vmatmul.mubr.bf16.gmra.mrb[40].mxu1 %v727_v53 }
 0x231   : > { %1151 = vmatprep.mubr.bf16.mxu0 %v2300_v45  ;;  %1264 = vmatprep.mubr.bf16.mxu1 %v2300_v45 }
 0x238   : > { %1152 = vmatmul.mubr.bf16.gmra.mrb[44].mxu0 %v728_v52  ;;  %1265 = vmatmul.mubr.bf16.gmra.mrb[44].mxu1 %v728_v52 }
 0x239   : > { %1307 = vmatprep.mubr.bf16.mxu0 %v2300_v45  ;;  %1357 = vmatprep.mubr.bf16.mxu1 %v2300_v45 }
 0x240   : > { %1308 = vmatmul.mubr.bf16.vlgmr.msra.gmra.mrb[48].mxu0 %v2519_v62  ;;  %1358 = vmatmul.mubr.bf16.vlgmr.msra.gmra.mrb[48].mxu1 %v2541_v32  ;;  %v793_v62 = vsub.s32 3, %v2581_v57 }
 0x241   : > { %1317 = vmatprep.mubr.bf16.mxu0 %v2300_v45  ;;  %1367 = vmatprep.mubr.bf16.mxu1 %v2300_v45 }
 0x248   : > { %1318 = vmatmul.mubr.bf16.gmra.mrb[52].mxu0 %v2517_v60  ;;  %1368 = vmatmul.mubr.bf16.gmra.mrb[52].mxu1 %v727_v53  ;;  %v2588_v60 = vld [vmem:[%s2867_s6] sm:$0x3f] }
 0x249   : > { %1327 = vmatprep.mubr.bf16.mxu0 %v2300_v45  ;;  %1377 = vmatprep.mubr.bf16.mxu1 %v2300_v45  ;;  %v2596_v63 = vrot.slane %v2588_v60, %v789_v59  ;;  %v2599_v0 = vrot.slane %v2588_v60, %v785_v61  ;;  %v2602_v1 = vrot.slane %v2588_v60, %v793_v62 }
 0x250   : > { %1328 = vmatmul.mubr.bf16.gmra.mrb[56].mxu0 %v2531_v15  ;;  %1378 = vmatmul.mubr.bf16.gmra.mrb[56].mxu1 %v728_v52 }
 0x251   : > { %1337 = vmatprep.mubr.bf16.mxu0 %v2300_v45 }
 0x258   : > { %1338 = vmatmul.mubr.bf16.gmra.mrb[60].mxu0 %v2529_v14 }
 0x259   : > { %1347 = vmatprep.mubr.bf16.mxu0 %v2300_v45  ;;  %v2593_v45 = vrot.slane %v2588_v60, %v781_v58 }
 0x260   : > { %1348 = vmatmul.mubr.bf16.gmra.mrb[64].mxu0 %v2543_v34 }
 0x2d3   : > { %v1083_v2 = vpop.f32.mrb[16].mxu0  ;;  %v1196_v3 = vpop.f32.mrb[16].mxu1 }
 0x2d4   : > { %v1084_v4 = vadd.f32 %v1083_v2, %v2593_v45  ;;  %v1197_v5 = vadd.f32 %v1196_v3, %v2596_v63  ;;  %v1085_v6 = vpop.f32.mrb[17].mxu0  ;;  %v1198_v7 = vpop.f32.mrb[17].mxu1 }
 0x2d5   : > { %v1086_v8 = vadd.f32 %v1085_v6, %v2599_v0  ;;  %v1199_v9 = vadd.f32 %v1198_v7, %v2602_v1  ;;  %v1087_v10 = vpop.f32.mrb[18].mxu0  ;;  %v1200_v11 = vpop.f32.mrb[18].mxu1 }
 0x2d6   : > { %2009 = vtanh.f32 %v1084_v4  ;;  %v1088_v12 = vadd.f32 %v1087_v10, %v2593_v45  ;;  %v1089_v13 = vpop.f32.mrb[19].mxu0  ;;  %v1202_v14 = vpop.f32.mrb[19].mxu1  ;;  %v1201_v15 = vadd.f32 %v1200_v11, %v2596_v63 }
 0x2d7   : > { %2011 = vtanh.f32 %v1197_v5  ;;  %v1090_v16 = vadd.f32 %v1089_v13, %v2599_v0  ;;  %v1203_v17 = vadd.f32 %v1202_v14, %v2602_v1 }
 0x2d8   : > { %2013 = vtanh.f32 %v1086_v8 }
 0x2d9   : > { %2015 = vtanh.f32 %v1199_v9 }
 0x2da   : > { %2017 = vtanh.f32 %v1088_v12 }
 0x2db   : > { %2019 = vtanh.f32 %v1201_v15  ;;  %v1093_v18 = vpop.f32.mrb[20].mxu0  ;;  %v1206_v19 = vpop.f32.mrb[20].mxu1 }
 0x2dc   : > { %2021 = vtanh.f32 %v1090_v16  ;;  %v1094_v20 = vadd.f32 %v1093_v18, %v2593_v45  ;;  %v1207_v21 = vadd.f32 %v1206_v19, %v2596_v63  ;;  %v1095_v22 = vpop.f32.mrb[21].mxu0  ;;  %v1208_v23 = vpop.f32.mrb[21].mxu1 }
 0x2dd   : > { %2023 = vtanh.f32 %v1203_v17  ;;  %v1096_v24 = vadd.f32 %v1095_v22, %v2599_v0  ;;  %v1209_v25 = vadd.f32 %v1208_v23, %v2602_v1  ;;  %v1097_v26 = vpop.f32.mrb[22].mxu0  ;;  %v1210_v27 = vpop.f32.mrb[22].mxu1 }
 0x2de   : > { %2025 = vtanh.f32 %v1094_v20  ;;  %v1098_v28 = vadd.f32 %v1097_v26, %v2593_v45  ;;  %v1099_v29 = vpop.f32.mrb[23].mxu0  ;;  %v1212_v30 = vpop.f32.mrb[23].mxu1  ;;  %v1211_v31 = vadd.f32 %v1210_v27, %v2596_v63 }
 0x2df   : > { %2027 = vtanh.f32 %v1207_v21  ;;  %v1100_v34 = vadd.f32 %v1099_v29, %v2599_v0  ;;  %v1213_v36 = vadd.f32 %v1212_v30, %v2602_v1 }
 0x2e0   : > { %v2010_v32 = vpop.eup %2009  ;;  %2029 = vtanh.f32 %v1096_v24 }
 0x2e1   : > { %v2012_v35 = vpop.eup %2011  ;;  %1484 = vst [vmem:[%s2622_s8] sm:$0xff] %v2010_v32  ;;  %2031 = vtanh.f32 %v1209_v25 }
 0x2e2   : > { %v2014_v37 = vpop.eup %2013  ;;  %1486 = vst [vmem:[%s2622_s8 + $0x10] sm:$0xff] %v2012_v35  ;;  %2033 = vtanh.f32 %v1098_v28 }
 0x2e3   : > { %v2016_v38 = vpop.eup %2015  ;;  %1485 = vst [vmem:[%s2622_s8 + $0x8] sm:$0xff] %v2014_v37  ;;  %2035 = vtanh.f32 %v1211_v31  ;;  %v1103_v39 = vpop.f32.mrb[24].mxu0 }
 0x2e4   : > { %v1216_v40 = vpop.f32.mrb[24].mxu1  ;;  %v2018_v41 = vpop.eup %2017  ;;  %1487 = vst [vmem:[%s2622_s8 + $0x18] sm:$0xff] %v2016_v38  ;;  %2037 = vtanh.f32 %v1100_v34  ;;  %v1104_v42 = vadd.f32 %v1103_v39, %v2593_v45 }
 0x2e5   : > { %v1217_v33 = vadd.f32 %v1216_v40, %v2596_v63  ;;  %v1105_v43 = vpop.f32.mrb[25].mxu0  ;;  %v1218_v44 = vpop.f32.mrb[25].mxu1  ;;  %1490 = vst [vmem:[%s2622_s8 + $0x30] sm:$0xff] %v2018_v41  ;;  %2039 = vtanh.f32 %v1213_v36 }
 0x2e6   : > { %v2020_v46 = vpop.eup %2019  ;;  %v1106_v48 = vadd.f32 %v1105_v43, %v2599_v0  ;;  %v1219_v49 = vadd.f32 %v1218_v44, %v2602_v1  ;;  %v1107_v50 = vpop.f32.mrb[26].mxu0  ;;  %2041 = vtanh.f32 %v1104_v42 }
 0x2e7   : > { %v1220_v51 = vpop.f32.mrb[26].mxu1  ;;  %v2022_v52 = vpop.eup %2021  ;;  %1492 = vst [vmem:[%s2622_s8 + $0x40] sm:$0xff] %v2020_v46  ;;  %v1108_v53 = vadd.f32 %v1107_v50, %v2593_v45  ;;  %2043 = vtanh.f32 %v1217_v33 }
 0x2e8   : > { %v1109_v54 = vpop.f32.mrb[27].mxu0  ;;  %v1222_v55 = vpop.f32.mrb[27].mxu1  ;;  %1491 = vst [vmem:[%s2622_s8 + $0x38] sm:$0xff] %v2022_v52  ;;  %v1221_v56 = vadd.f32 %v1220_v51, %v2596_v63  ;;  %2045 = vtanh.f32 %v1106_v48 }
 0x2e9   : > { %v2024_v47 = vpop.eup %2023  ;;  %v1110_v59 = vadd.f32 %v1109_v54, %v2599_v0  ;;  %2047 = vtanh.f32 %v1219_v49  ;;  %v1223_v62 = vadd.f32 %v1222_v55, %v2602_v1 }
 0x2ea   : > { %v2026_v58 = vpop.eup %2025  ;;  %1493 = vst [vmem:[%s2622_s8 + $0x48] sm:$0xff] %v2024_v47  ;;  %2049 = vtanh.f32 %v1108_v53 }
 0x2eb   : > { %v2028_v61 = vpop.eup %2027  ;;  %1496 = vst [vmem:[%s2622_s8 + $0x60] sm:$0xff] %v2026_v58  ;;  %2051 = vtanh.f32 %v1221_v56  ;;  %v1113_v4 = vpop.f32.mrb[28].mxu0 }
 0x2ec   : > { %v2030_v2 = vpop.eup %2029  ;;  %1498 = vst [vmem:[%s2622_s8 + $0x70] sm:$0xff] %v2028_v61  ;;  %v1226_v5 = vpop.f32.mrb[28].mxu1  ;;  %2053 = vtanh.f32 %v1110_v59  ;;  %v1114_v7 = vadd.f32 %v1113_v4, %v2593_v45 }
 0x2ed   : > { %v2032_v3 = vpop.eup %2031  ;;  %1497 = vst [vmem:[%s2622_s8 + $0x68] sm:$0xff] %v2030_v2  ;;  %v1227_v8 = vadd.f32 %v1226_v5, %v2596_v63  ;;  %v1115_v9 = vpop.f32.mrb[29].mxu0  ;;  %2055 = vtanh.f32 %v1223_v62 }
 0x2ee   : > { %v2034_v6 = vpop.eup %2033  ;;  %1499 = vst [vmem:[%s2622_s8 + $0x78] sm:$0xff] %v2032_v3  ;;  %v1228_v10 = vpop.f32.mrb[29].mxu1  ;;  %v1116_v12 = vadd.f32 %v1115_v9, %v2599_v0  ;;  %2057 = vtanh.f32 %v1114_v7 }
 0x2ef   : > { %v2036_v11 = vpop.eup %2035  ;;  %1502 = vst [vmem:[%s2622_s8 + $0x90] sm:$0xff] %v2034_v6  ;;  %v1229_v13 = vadd.f32 %v1228_v10, %v2602_v1  ;;  %v1117_v14 = vpop.f32.mrb[30].mxu0  ;;  %2059 = vtanh.f32 %v1227_v8 }
 0x2f0   : > { %v1230_v15 = vpop.f32.mrb[30].mxu1  ;;  %v2038_v16 = vpop.eup %2037  ;;  %1504 = vst [vmem:[%s2622_s8 + $0xa0] sm:$0xff] %v2036_v11  ;;  %v1118_v17 = vadd.f32 %v1117_v14, %v2593_v45  ;;  %2061 = vtanh.f32 %v1116_v12 }
 0x2f1   : > { %v1119_v18 = vpop.f32.mrb[31].mxu0  ;;  %v1232_v19 = vpop.f32.mrb[31].mxu1  ;;  %1503 = vst [vmem:[%s2622_s8 + $0x98] sm:$0xff] %v2038_v16  ;;  %v1231_v21 = vadd.f32 %v1230_v15, %v2596_v63  ;;  %2063 = vtanh.f32 %v1229_v13 }
 0x2f2   : > { %v2040_v20 = vpop.eup %2039  ;;  %v1120_v23 = vadd.f32 %v1119_v18, %v2599_v0  ;;  %v1233_v25 = vadd.f32 %v1232_v19, %v2602_v1  ;;  %2065 = vtanh.f32 %v1118_v17 }
 0x2f3   : > { %v2042_v22 = vpop.eup %2041  ;;  %1505 = vst [vmem:[%s2622_s8 + $0xa8] sm:$0xff] %v2040_v20  ;;  %2067 = vtanh.f32 %v1231_v21  ;;  %v1123_v28 = vpop.f32.mrb[32].mxu0 }
 0x2f4   : > { %v2044_v24 = vpop.eup %2043  ;;  %1508 = vst [vmem:[%s2622_s8 + $0xc0] sm:$0xff] %v2042_v22  ;;  %v1236_v29 = vpop.f32.mrb[32].mxu1  ;;  %2069 = vtanh.f32 %v1120_v23  ;;  %v1124_v31 = vadd.f32 %v1123_v28, %v2593_v45 }
 0x2f5   : > { %v2046_v26 = vpop.eup %2045  ;;  %1510 = vst [vmem:[%s2622_s8 + $0xd0] sm:$0xff] %v2044_v24  ;;  %v1237_v32 = vadd.f32 %v1236_v29, %v2596_v63  ;;  %v1125_v34 = vpop.f32.mrb[33].mxu0  ;;  %2071 = vtanh.f32 %v1233_v25 }
 0x2f6   : > { %v2048_v27 = vpop.eup %2047  ;;  %1509 = vst [vmem:[%s2622_s8 + $0xc8] sm:$0xff] %v2046_v26  ;;  %v1238_v35 = vpop.f32.mrb[33].mxu1  ;;  %v1126_v37 = vadd.f32 %v1125_v34, %v2599_v0  ;;  %2073 = vtanh.f32 %v1124_v31 }
 0x2f7   : > { %v2050_v30 = vpop.eup %2049  ;;  %1511 = vst [vmem:[%s2622_s8 + $0xd8] sm:$0xff] %v2048_v27  ;;  %v1239_v38 = vadd.f32 %v1238_v35, %v2602_v1  ;;  %v1127_v39 = vpop.f32.mrb[34].mxu0  ;;  %2075 = vtanh.f32 %v1237_v32 }
 0x2f8   : > { %v2052_v36 = vpop.eup %2051  ;;  %1514 = vst [vmem:[%s2622_s8 + $0xf0] sm:$0xff] %v2050_v30  ;;  %v1240_v40 = vpop.f32.mrb[34].mxu1  ;;  %v1128_v42 = vadd.f32 %v1127_v39, %v2593_v45  ;;  %2077 = vtanh.f32 %v1126_v37 }
 0x2f9   : > { %v2054_v41 = vpop.eup %2053  ;;  %1516 = vst [vmem:[%s2622_s8 + $0x100] sm:$0xff] %v2052_v36  ;;  %v1129_v33 = vpop.f32.mrb[35].mxu0  ;;  %v1241_v46 = vadd.f32 %v1240_v40, %v2596_v63  ;;  %2079 = vtanh.f32 %v1239_v38 }
 0x2fa   : > { %v1242_v43 = vpop.f32.mrb[35].mxu1  ;;  %v2056_v44 = vpop.eup %2055  ;;  %1515 = vst [vmem:[%s2622_s8 + $0xf8] sm:$0xff] %v2054_v41  ;;  %v1130_v49 = vadd.f32 %v1129_v33, %v2599_v0  ;;  %2081 = vtanh.f32 %v1128_v42 }
 0x2fb   : > { %v2058_v48 = vpop.eup %2057  ;;  %1517 = vst [vmem:[%s2622_s8 + $0x108] sm:$0xff] %v2056_v44  ;;  %v1243_v51 = vadd.f32 %v1242_v43, %v2602_v1  ;;  %2083 = vtanh.f32 %v1241_v46  ;;  %v1133_v54 = vpop.f32.mrb[36].mxu0 }
 0x2fc   : > { %v2060_v50 = vpop.eup %2059  ;;  %1520 = vst [vmem:[%s2622_s8 + $0x120] sm:$0xff] %v2058_v48  ;;  %v1246_v55 = vpop.f32.mrb[36].mxu1  ;;  %2085 = vtanh.f32 %v1130_v49  ;;  %v1134_v56 = vadd.f32 %v1133_v54, %v2593_v45 }
 0x2fd   : > { %v2062_v52 = vpop.eup %2061  ;;  %1522 = vst [vmem:[%s2622_s8 + $0x130] sm:$0xff] %v2060_v50  ;;  %v1247_v58 = vadd.f32 %v1246_v55, %v2596_v63  ;;  %v1135_v59 = vpop.f32.mrb[37].mxu0  ;;  %2087 = vtanh.f32 %v1243_v51  ;;  %v797_v51 = vsub.s32 4, %v2581_v57 }
 0x2fe   : > { %v2064_v53 = vpop.eup %2063  ;;  %1521 = vst [vmem:[%s2622_s8 + $0x128] sm:$0xff] %v2062_v52  ;;  %v1248_v61 = vpop.f32.mrb[37].mxu1  ;;  %v1136_v2 = vadd.f32 %v1135_v59, %v2599_v0  ;;  %2089 = vtanh.f32 %v1134_v56  ;;  %v801_v56 = vsub.s32 5, %v2581_v57 }
 0x2ff   : > { %v2066_v47 = vpop.eup %2065  ;;  %1523 = vst [vmem:[%s2622_s8 + $0x138] sm:$0xff] %v2064_v53  ;;  %v1249_v3 = vadd.f32 %v1248_v61, %v2602_v1  ;;  %v1137_v4 = vpop.f32.mrb[38].mxu0  ;;  %2091 = vtanh.f32 %v1247_v58 }
 0x300   : > { %v2068_v62 = vpop.eup %2067  ;;  %1526 = vst [vmem:[%s2622_s8 + $0x150] sm:$0xff] %v2066_v47  ;;  %v1250_v5 = vpop.f32.mrb[38].mxu1  ;;  %v1138_v7 = vadd.f32 %v1137_v4, %v2593_v45  ;;  %2093 = vtanh.f32 %v1136_v2 }
 0x301   : > { %v2070_v6 = vpop.eup %2069  ;;  %1528 = vst [vmem:[%s2622_s8 + $0x160] sm:$0xff] %v2068_v62  ;;  %v1139_v8 = vpop.f32.mrb[39].mxu0  ;;  %v1251_v11 = vadd.f32 %v1250_v5, %v2596_v63  ;;  %2095 = vtanh.f32 %v1249_v3  ;;  %v2723_v5 = vrot.slane %v2588_v60, %v797_v51 }
 0x302   : > { %v1252_v9 = vpop.f32.mrb[39].mxu1  ;;  %v2072_v10 = vpop.eup %2071  ;;  %1527 = vst [vmem:[%s2622_s8 + $0x158] sm:$0xff] %v2070_v6  ;;  %v1140_v13 = vadd.f32 %v1139_v8, %v2599_v0  ;;  %2097 = vtanh.f32 %v1138_v7  ;;  %v2728_v7 = vrot.slane %v2588_v60, %v801_v56 }
 0x303   : > { %v2074_v12 = vpop.eup %2073  ;;  %1529 = vst [vmem:[%s2622_s8 + $0x168] sm:$0xff] %v2072_v10  ;;  %v1253_v15 = vadd.f32 %v1252_v9, %v2602_v1  ;;  %2099 = vtanh.f32 %v1251_v11  ;;  %v1143_v18 = vpop.f32.mrb[40].mxu0 }
 0x304   : > { %v2076_v14 = vpop.eup %2075  ;;  %1532 = vst [vmem:[%s2622_s8 + $0x180] sm:$0xff] %v2074_v12  ;;  %v1256_v19 = vpop.f32.mrb[40].mxu1  ;;  %2101 = vtanh.f32 %v1140_v13  ;;  %v1144_v21 = vadd.f32 %v1143_v18, %v2593_v45 }
 0x305   : > { %v2078_v16 = vpop.eup %2077  ;;  %1534 = vst [vmem:[%s2622_s8 + $0x190] sm:$0xff] %v2076_v14  ;;  %v1257_v22 = vadd.f32 %v1256_v19, %v2596_v63  ;;  %v1145_v23 = vpop.f32.mrb[41].mxu0  ;;  %2103 = vtanh.f32 %v1253_v15 }
 0x306   : > { %v2080_v17 = vpop.eup %2079  ;;  %1533 = vst [vmem:[%s2622_s8 + $0x188] sm:$0xff] %v2078_v16  ;;  %v1258_v24 = vpop.f32.mrb[41].mxu1  ;;  %v1146_v26 = vadd.f32 %v1145_v23, %v2599_v0  ;;  %2105 = vtanh.f32 %v1144_v21 }
 0x307   : > { %v2082_v20 = vpop.eup %2081  ;;  %1535 = vst [vmem:[%s2622_s8 + $0x198] sm:$0xff] %v2080_v17  ;;  %v1259_v27 = vadd.f32 %v1258_v24, %v2602_v1  ;;  %v1147_v28 = vpop.f32.mrb[42].mxu0  ;;  %2107 = vtanh.f32 %v1257_v22 }
 0x308   : > { %v2084_v25 = vpop.eup %2083  ;;  %1538 = vst [vmem:[%s2622_s8 + $0x1b0] sm:$0xff] %v2082_v20  ;;  %v1260_v29 = vpop.f32.mrb[42].mxu1  ;;  %v1148_v31 = vadd.f32 %v1147_v28, %v2593_v45  ;;  %2109 = vtanh.f32 %v1146_v26 }
 0x309   : > { %v2086_v30 = vpop.eup %2085  ;;  %1540 = vst [vmem:[%s2622_s8 + $0x1c0] sm:$0xff] %v2084_v25  ;;  %v1149_v32 = vpop.f32.mrb[43].mxu0  ;;  %v1261_v36 = vadd.f32 %v1260_v29, %v2596_v63  ;;  %2111 = vtanh.f32 %v1259_v27 }
 0x30a   : > { %v1262_v34 = vpop.f32.mrb[43].mxu1  ;;  %v2088_v35 = vpop.eup %2087  ;;  %1539 = vst [vmem:[%s2622_s8 + $0x1b8] sm:$0xff] %v2086_v30  ;;  %v1150_v38 = vadd.f32 %v1149_v32, %v2599_v0  ;;  %2113 = vtanh.f32 %v1148_v31 }
 0x30b   : > { %v2090_v37 = vpop.eup %2089  ;;  %1541 = vst [vmem:[%s2622_s8 + $0x1c8] sm:$0xff] %v2088_v35  ;;  %v1263_v40 = vadd.f32 %v1262_v34, %v2602_v1  ;;  %2115 = vtanh.f32 %v1261_v36  ;;  %v1153_v33 = vpop.f32.mrb[44].mxu0 }
 0x30c   : > { %v2092_v39 = vpop.eup %2091  ;;  %1544 = vst [vmem:[%s2622_s8 + $0x1e0] sm:$0xff] %v2090_v37  ;;  %v1266_v43 = vpop.f32.mrb[44].mxu1  ;;  %2117 = vtanh.f32 %v1150_v38  ;;  %v1154_v46 = vadd.f32 %v1153_v33, %v2593_v45 }
 0x30d   : > { %v2094_v41 = vpop.eup %2093  ;;  %1546 = vst [vmem:[%s2622_s8 + $0x1f0] sm:$0xff] %v2092_v39  ;;  %v1267_v48 = vadd.f32 %v1266_v43, %v2596_v63  ;;  %v1155_v49 = vpop.f32.mrb[45].mxu0  ;;  %2119 = vtanh.f32 %v1263_v40 }
 0x30e   : > { %v2096_v42 = vpop.eup %2095  ;;  %1545 = vst [vmem:[%s2622_s8 + $0x1e8] sm:$0xff] %v2094_v41  ;;  %v1268_v50 = vpop.f32.mrb[45].mxu1  ;;  %v1156_v53 = vadd.f32 %v1155_v49, %v2599_v0  ;;  %2121 = vtanh.f32 %v1154_v46 }
 0x30f   : > { %v2098_v44 = vpop.eup %2097  ;;  %1547 = vst [vmem:[%s2622_s8 + $0x1f8] sm:$0xff] %v2096_v42  ;;  %v1269_v54 = vadd.f32 %v1268_v50, %v2602_v1  ;;  %v1157_v55 = vpop.f32.mrb[46].mxu0  ;;  %2123 = vtanh.f32 %v1267_v48 }
 0x310   : > { %v2100_v52 = vpop.eup %2099  ;;  %1550 = vst [vmem:[%s2622_s8 + $0x210] sm:$0xff] %v2098_v44  ;;  %v1270_v47 = vpop.f32.mrb[46].mxu1  ;;  %v1158_v59 = vadd.f32 %v1157_v55, %v2593_v45  ;;  %2125 = vtanh.f32 %v1156_v53 }
 0x311   : > { %v2102_v58 = vpop.eup %2101  ;;  %1552 = vst [vmem:[%s2622_s8 + $0x220] sm:$0xff] %v2100_v52  ;;  %v1159_v61 = vpop.f32.mrb[47].mxu0  ;;  %v1271_v3 = vadd.f32 %v1270_v47, %v2596_v63  ;;  %2127 = vtanh.f32 %v1269_v54 }
 0x312   : > { %v1272_v62 = vpop.f32.mrb[47].mxu1  ;;  %v2104_v2 = vpop.eup %2103  ;;  %1551 = vst [vmem:[%s2622_s8 + $0x218] sm:$0xff] %v2102_v58  ;;  %v1160_v57 = vadd.f32 %v1159_v61, %v2599_v0  ;;  %2129 = vtanh.f32 %v1158_v59 }
 0x313   : > { %v2106_v4 = vpop.eup %2105  ;;  %1553 = vst [vmem:[%s2622_s8 + $0x228] sm:$0xff] %v2104_v2  ;;  %v1273_v45 = vadd.f32 %v1272_v62, %v2602_v1  ;;  %2131 = vtanh.f32 %v1271_v3  ;;  %v1309_v0 = vpop.f32.mrb[48].mxu0 }
 0x314   : > { %v2108_v6 = vpop.eup %2107  ;;  %1556 = vst [vmem:[%s2622_s8 + $0x240] sm:$0xff] %v2106_v4  ;;  %v1359_v9 = vpop.f32.mrb[48].mxu1  ;;  %2133 = vtanh.f32 %v1160_v57  ;;  %v1310_v11 = vadd.f32 %v1309_v0, %v2723_v5 }
 0x315   : > { %v2110_v8 = vpop.eup %2109  ;;  %1558 = vst [vmem:[%s2622_s8 + $0x250] sm:$0xff] %v2108_v6  ;;  %v1360_v1 = vadd.f32 %v1359_v9, %v2723_v5  ;;  %v1311_v12 = vpop.f32.mrb[49].mxu0  ;;  %2135 = vtanh.f32 %v1273_v45 }
 0x316   : > { %v2112_v63 = vpop.eup %2111  ;;  %1557 = vst [vmem:[%s2622_s8 + $0x248] sm:$0xff] %v2110_v8  ;;  %v1361_v60 = vpop.f32.mrb[49].mxu1  ;;  %v1312_v14 = vadd.f32 %v1311_v12, %v2728_v7  ;;  %2137 = vtanh.f32 %v1310_v11 }
 0x317   : > { %v2114_v10 = vpop.eup %2113  ;;  %1559 = vst [vmem:[%s2622_s8 + $0x258] sm:$0xff] %v2112_v63  ;;  %v1362_v15 = vadd.f32 %v1361_v60, %v2728_v7  ;;  %v1313_v16 = vpop.f32.mrb[50].mxu0  ;;  %2139 = vtanh.f32 %v1360_v1 }
 0x318   : > { %v2116_v13 = vpop.eup %2115  ;;  %1562 = vst [vmem:[%s2622_s8 + $0x270] sm:$0xff] %v2114_v10  ;;  %v1363_v17 = vpop.f32.mrb[50].mxu1  ;;  %v1314_v19 = vadd.f32 %v1313_v16, %v2723_v5  ;;  %2141 = vtanh.f32 %v1312_v14 }
 0x319   : > { %v2118_v18 = vpop.eup %2117  ;;  %1564 = vst [vmem:[%s2622_s8 + $0x280] sm:$0xff] %v2116_v13  ;;  %v1315_v20 = vpop.f32.mrb[51].mxu0  ;;  %v1364_v23 = vadd.f32 %v1363_v17, %v2723_v5  ;;  %2143 = vtanh.f32 %v1362_v15 }
 0x31a   : > { %v1365_v21 = vpop.f32.mrb[51].mxu1  ;;  %v2120_v22 = vpop.eup %2119  ;;  %1563 = vst [vmem:[%s2622_s8 + $0x278] sm:$0xff] %v2118_v18  ;;  %v1316_v25 = vadd.f32 %v1315_v20, %v2728_v7  ;;  %2145 = vtanh.f32 %v1314_v19 }
 0x31b   : > { %v2122_v24 = vpop.eup %2121  ;;  %1565 = vst [vmem:[%s2622_s8 + $0x288] sm:$0xff] %v2120_v22  ;;  %v1366_v27 = vadd.f32 %v1365_v21, %v2728_v7  ;;  %2147 = vtanh.f32 %v1364_v23  ;;  %v1319_v30 = vpop.f32.mrb[52].mxu0 }
 0x31c   : > { %v2124_v26 = vpop.eup %2123  ;;  %1568 = vst [vmem:[%s2622_s8 + $0x2a0] sm:$0xff] %v2122_v24  ;;  %v1369_v31 = vpop.f32.mrb[52].mxu1  ;;  %2149 = vtanh.f32 %v1316_v25  ;;  %v1320_v34 = vadd.f32 %v1319_v30, %v2723_v5 }
 0x31d   : > { %v2126_v28 = vpop.eup %2125  ;;  %1570 = vst [vmem:[%s2622_s8 + $0x2b0] sm:$0xff] %v2124_v26  ;;  %v1370_v35 = vadd.f32 %v1369_v31, %v2723_v5  ;;  %v1321_v36 = vpop.f32.mrb[53].mxu0  ;;  %2151 = vtanh.f32 %v1366_v27 }
 0x31e   : > { %v2128_v29 = vpop.eup %2127  ;;  %1569 = vst [vmem:[%s2622_s8 + $0x2a8] sm:$0xff] %v2126_v28  ;;  %v1371_v37 = vpop.f32.mrb[53].mxu1  ;;  %v1322_v39 = vadd.f32 %v1321_v36, %v2728_v7  ;;  %2153 = vtanh.f32 %v1320_v34 }
 0x31f   : > { %v2130_v32 = vpop.eup %2129  ;;  %1571 = vst [vmem:[%s2622_s8 + $0x2b8] sm:$0xff] %v2128_v29  ;;  %v1372_v40 = vadd.f32 %v1371_v37, %v2728_v7  ;;  %v1323_v41 = vpop.f32.mrb[54].mxu0  ;;  %2155 = vtanh.f32 %v1370_v35 }
 0x320   : > { %v2132_v38 = vpop.eup %2131  ;;  %1574 = vst [vmem:[%s2622_s8 + $0x2d0] sm:$0xff] %v2130_v32  ;;  %v1373_v42 = vpop.f32.mrb[54].mxu1  ;;  %v1324_v43 = vadd.f32 %v1323_v41, %v2723_v5  ;;  %2157 = vtanh.f32 %v1322_v39 }
 0x321   : > { %v2134_v33 = vpop.eup %2133  ;;  %1576 = vst [vmem:[%s2622_s8 + $0x2e0] sm:$0xff] %v2132_v38  ;;  %v1325_v44 = vpop.f32.mrb[55].mxu0  ;;  %v1374_v49 = vadd.f32 %v1373_v42, %v2723_v5  ;;  %2159 = vtanh.f32 %v1372_v40 }
 0x322   : > { %v1375_v46 = vpop.f32.mrb[55].mxu1  ;;  %v2136_v48 = vpop.eup %2135  ;;  %1575 = vst [vmem:[%s2622_s8 + $0x2d8] sm:$0xff] %v2134_v33  ;;  %v1326_v51 = vadd.f32 %v1325_v44, %v2728_v7  ;;  %2161 = vtanh.f32 %v1324_v43 }
 0x323   : > { %v2138_v50 = vpop.eup %2137  ;;  %1577 = vst [vmem:[%s2622_s8 + $0x2e8] sm:$0xff] %v2136_v48  ;;  %v1376_v53 = vadd.f32 %v1375_v46, %v2728_v7  ;;  %2163 = vtanh.f32 %v1374_v49  ;;  %v1329_v47 = vpop.f32.mrb[56].mxu0 }
 0x324   : > { %v2140_v52 = vpop.eup %2139  ;;  %1488 = vst [vmem:[%s2622_s8 + $0x20] sm:$0xff] %v2138_v50  ;;  %v1379_v56 = vpop.f32.mrb[56].mxu1  ;;  %2165 = vtanh.f32 %v1326_v51  ;;  %v1330_v59 = vadd.f32 %v1329_v47, %v2723_v5 }
 0x325   : > { %v2142_v54 = vpop.eup %2141  ;;  %1548 = vst [vmem:[%s2622_s8 + $0x200] sm:$0xff] %v2140_v52  ;;  %v1380_v61 = vadd.f32 %v1379_v56, %v2723_v5  ;;  %v1331_v62 = vpop.f32.mrb[57].mxu0  ;;  %2167 = vtanh.f32 %v1376_v53 }
 0x326   : > { %v2144_v55 = vpop.eup %2143  ;;  %1489 = vst [vmem:[%s2622_s8 + $0x28] sm:$0xff] %v2142_v54  ;;  %v1381_v2 = vpop.f32.mrb[57].mxu1  ;;  %v1332_v4 = vadd.f32 %v1331_v62, %v2728_v7  ;;  %2169 = vtanh.f32 %v1330_v59 }
 0x327   : > { %v2146_v58 = vpop.eup %2145  ;;  %1549 = vst [vmem:[%s2622_s8 + $0x208] sm:$0xff] %v2144_v55  ;;  %v1382_v57 = vadd.f32 %v1381_v2, %v2728_v7  ;;  %v1333_v6 = vpop.f32.mrb[58].mxu0  ;;  %2171 = vtanh.f32 %v1380_v61 }
 0x328   : > { %v2148_v3 = vpop.eup %2147  ;;  %1494 = vst [vmem:[%s2622_s8 + $0x50] sm:$0xff] %v2146_v58  ;;  %v1383_v45 = vpop.f32.mrb[58].mxu1  ;;  %v1334_v63 = vadd.f32 %v1333_v6, %v2723_v5  ;;  %2173 = vtanh.f32 %v1332_v4 }
 0x329   : > { %v2150_v8 = vpop.eup %2149  ;;  %1554 = vst [vmem:[%s2622_s8 + $0x230] sm:$0xff] %v2148_v3  ;;  %v1335_v0 = vpop.f32.mrb[59].mxu0  ;;  %v1384_v11 = vadd.f32 %v1383_v45, %v2723_v5  ;;  %2175 = vtanh.f32 %v1382_v57 }
 0x32a   : > { %v1385_v9 = vpop.f32.mrb[59].mxu1  ;;  %v2152_v10 = vpop.eup %2151  ;;  %1495 = vst [vmem:[%s2622_s8 + $0x58] sm:$0xff] %v2150_v8  ;;  %v1336_v12 = vadd.f32 %v1335_v0, %v2728_v7  ;;  %2177 = vtanh.f32 %v1334_v63 }
 0x32b   : > { %v2154_v1 = vpop.eup %2153  ;;  %1555 = vst [vmem:[%s2622_s8 + $0x238] sm:$0xff] %v2152_v10  ;;  %v1386_v13 = vadd.f32 %v1385_v9, %v2728_v7  ;;  %2179 = vtanh.f32 %v1384_v11  ;;  %v1339_v16 = vpop.f32.mrb[60].mxu0 }
 0x32c   : > { %v2156_v60 = vpop.eup %2155  ;;  %1500 = vst [vmem:[%s2622_s8 + $0x80] sm:$0xff] %v2154_v1  ;;  %2181 = vtanh.f32 %v1336_v12  ;;  %v1340_v18 = vadd.f32 %v1339_v16, %v2723_v5  ;;  %v1341_v19 = vpop.f32.mrb[61].mxu0 }
 0x32d   : > { %v2158_v14 = vpop.eup %2157  ;;  %1560 = vst [vmem:[%s2622_s8 + $0x260] sm:$0xff] %v2156_v60  ;;  %2183 = vtanh.f32 %v1386_v13  ;;  %v1342_v21 = vadd.f32 %v1341_v19, %v2728_v7  ;;  %v1343_v22 = vpop.f32.mrb[62].mxu0 }
 0x32e   : > { %v2160_v15 = vpop.eup %2159  ;;  %1501 = vst [vmem:[%s2622_s8 + $0x88] sm:$0xff] %v2158_v14  ;;  %2185 = vtanh.f32 %v1340_v18  ;;  %v1344_v24 = vadd.f32 %v1343_v22, %v2723_v5  ;;  %v1345_v25 = vpop.f32.mrb[63].mxu0 }
 0x32f   : > { %v2162_v17 = vpop.eup %2161  ;;  %1561 = vst [vmem:[%s2622_s8 + $0x268] sm:$0xff] %v2160_v15  ;;  %2187 = vtanh.f32 %v1342_v21  ;;  %v1346_v27 = vadd.f32 %v1345_v25, %v2728_v7 }
 0x330   : > { %v2164_v20 = vpop.eup %2163  ;;  %1506 = vst [vmem:[%s2622_s8 + $0xb0] sm:$0xff] %v2162_v17  ;;  %2189 = vtanh.f32 %v1344_v24 }
 0x331   : > { %v2166_v23 = vpop.eup %2165  ;;  %1566 = vst [vmem:[%s2622_s8 + $0x290] sm:$0xff] %v2164_v20  ;;  %2191 = vtanh.f32 %v1346_v27 }
 0x332   : > { %v2168_v26 = vpop.eup %2167  ;;  %1507 = vst [vmem:[%s2622_s8 + $0xb8] sm:$0xff] %v2166_v23 }
 0x333   : > { %v2170_v28 = vpop.eup %2169  ;;  %1567 = vst [vmem:[%s2622_s8 + $0x298] sm:$0xff] %v2168_v26  ;;  %v1349_v32 = vpop.f32.mrb[64].mxu0 }
 0x334   : > { %v2172_v29 = vpop.eup %2171  ;;  %1512 = vst [vmem:[%s2622_s8 + $0xe0] sm:$0xff] %v2170_v28  ;;  %v1350_v35 = vadd.f32 %v1349_v32, %v2723_v5  ;;  %v1351_v36 = vpop.f32.mrb[65].mxu0 }
 0x335   : > { %v2174_v30 = vpop.eup %2173  ;;  %1572 = vst [vmem:[%s2622_s8 + $0x2c0] sm:$0xff] %v2172_v29  ;;  %v1352_v38 = vadd.f32 %v1351_v36, %v2728_v7  ;;  %v1353_v39 = vpop.f32.mrb[66].mxu0 }
 0x336   : > { %v2176_v31 = vpop.eup %2175  ;;  %1513 = vst [vmem:[%s2622_s8 + $0xe8] sm:$0xff] %v2174_v30  ;;  %2193 = vtanh.f32 %v1350_v35  ;;  %v1354_v41 = vadd.f32 %v1353_v39, %v2723_v5  ;;  %v1355_v42 = vpop.f32.mrb[67].mxu0 }
 0x337   : > { %v2178_v34 = vpop.eup %2177  ;;  %1573 = vst [vmem:[%s2622_s8 + $0x2c8] sm:$0xff] %v2176_v31  ;;  %2195 = vtanh.f32 %v1352_v38  ;;  %v1356_v43 = vadd.f32 %v1355_v42, %v2728_v7 }
 0x338   : > { %v2180_v37 = vpop.eup %2179  ;;  %1518 = vst [vmem:[%s2622_s8 + $0x110] sm:$0xff] %v2178_v34  ;;  %2197 = vtanh.f32 %v1354_v41 }
 0x339   : > { %v2182_v40 = vpop.eup %2181  ;;  %1578 = vst [vmem:[%s2622_s8 + $0x2f0] sm:$0xff] %v2180_v37  ;;  %2199 = vtanh.f32 %v1356_v43 }
 0x33a   : > { %v2184_v33 = vpop.eup %2183  ;;  %1519 = vst [vmem:[%s2622_s8 + $0x118] sm:$0xff] %v2182_v40 }
 0x33b   : > { %v2186_v44 = vpop.eup %2185  ;;  %1579 = vst [vmem:[%s2622_s8 + $0x2f8] sm:$0xff] %v2184_v33 }
 0x33c   : > { %v2188_v46 = vpop.eup %2187  ;;  %1524 = vst [vmem:[%s2622_s8 + $0x140] sm:$0xff] %v2186_v44 }
 0x33d   : > { %v2190_v48 = vpop.eup %2189  ;;  %1525 = vst [vmem:[%s2622_s8 + $0x148] sm:$0xff] %v2188_v46 }
 0x33e   : > { %v2192_v5 = vpop.eup %2191  ;;  %1530 = vst [vmem:[%s2622_s8 + $0x170] sm:$0xff] %v2190_v48 }
 0x33f   : > { %1531 = vst [vmem:[%s2622_s8 + $0x178] sm:$0xff] %v2192_v5 }
 0x340   : > { %v2194_v7 = vpop.eup %2193 }
 0x341   : > { %v2196_v49 = vpop.eup %2195  ;;  %1536 = vst [vmem:[%s2622_s8 + $0x1a0] sm:$0xff] %v2194_v7 }
 0x342   : > { %v2198_v50 = vpop.eup %2197  ;;  %1537 = vst [vmem:[%s2622_s8 + $0x1a8] sm:$0xff] %v2196_v49 }
 0x343   : > { %v2200_v51 = vpop.eup %2199  ;;  %1542 = vst [vmem:[%s2622_s8 + $0x1d0] sm:$0xff] %v2198_v50 }
 0x344   : > { %1543 = vst [vmem:[%s2622_s8 + $0x1d8] sm:$0xff] %v2200_v51 }
 0x345   : > { %2242 = shalt.err (!%p2239_p7)
}
 0x346   : > { %s2243_s15 = scalar_lea.hbm %s2811_s19, 12288  ;;  %s2247_s29 = scalar_lea.hbm %s2868_s7, 24576 }
 0x347   : > { %p2244_p8 = scmp.ne.s32.totalorder %s2811_s19, %s2243_s15  ;;  %p2248_p1 = scmp.lt.u32.totalorder %s2811_s19, %s2868_s7 }
 0x348   : > { %p2249_p0 = scmp.lt.u32.totalorder %s2247_s29, %s2243_s15  ;;  %p2251_p6 = scmp.lt.u32.totalorder %s2243_s15, %s2811_s19 }
 0x349   : > { %p2245_p11 = pnand %p2244_p8, %p2879_p9 }
 0x34a   : > { %p2250_p5 = por %p2249_p0, %p2248_p1 }
 0x34b   : > { %p2246_p13 = pneg %p2245_p11 }
 0x34c   : > { %p2252_p10 = por %p2251_p6, %p2250_p5 }
 0x34e   : > { %p2253_p12 = pnand %p2252_p10, %p2246_p13 }
 0x350   : > { %2256 = shalt.err (!%p2253_p12)
}
 0x351   : > { %s2302_s17 = smov 768   ;;  %s2303_s18 = smov 48  }
 0x352   : > { %1866 = dma.vmem_to_hbm [thread:$0]  (%p2879_p9), %s2814_s14, 12288, %s2811_s19, %s2820_s28, %s2302_s17, %s2302_s17, %s2303_s18  }
 0x353 PF: > { %p1878_p2 = scmp.ge.s32.totalorder %s2295_s27, 2  ;;  %s1610_s23 = sand.u32 1, %s2283_s24  }
 0x354   : > { %p2880_p3 = scmp.ne.s32.totalorder %s2873_s12, 0  ;;  %s1611_s20 = scalar_lea.sflag [#allocation4], %s1610_s23 }
 0x356   : > { %p1873_p4 = pnand %p1878_p2, %p2880_p3 }
 0x358   : > { %2278 = dma.done.wait (!%p1873_p4), %s1611_s20, 12288  }
 0x359   : > { %2280 = vsyncadd (!%p1873_p4), %s1611_s20, 4294955008  ;;  %p18_p7 = scmp.ge.s32.totalorder %s2369_s30, 4   ;;  %s2881_s24 = smov %s2287_s25 }
 0x35a   : > { %s2882_s25 = smov %s2291_s26  ;;  %s2883_s26 = smov %s2380_s10 }
 0x35b   : > { %s2884_s27 = smov %s2369_s30  ;;  %20 = sbr.rel (!%p18_p7) target bundleno = 4 (0x4), region = 88 }
 0x362   :  { %1616 = vsyncpa [#allocation3], 1 }
 0x363   :  { %1618 = vsyncpa [#allocation3 + $0x1], 1 }
 0x364   :  { %1619 = vsyncpa [#allocation4], 1 }
 0x365   :  { %1621 = vsyncpa [#allocation4 + $0x1], 1 }

</bundles_post_ra>
